<compile_context>
chip_gen: v7x
topology: tpu7x:2x2x1
jax: 0.10.0
libtpu: 0.0.40
codegen_flags: <defaults>
</compile_context>

<pallas_src>
import jax
import jax.numpy as jnp
from jax.experimental import pallas as pl
from jax.experimental.pallas import tpu as pltpu

FEATURES_DIM = 768
H1 = 768
H2 = 256
OUT_PAD = 128  # real output dim is 1; padded to a full lane width


def _round_up(n, m):
    return ((n + m - 1) // m) * m


def _mlp_kernel(x_ref, w1_ref, b1_ref, w2_ref, b2_ref, w3_ref, b3_ref, o_ref):
    wdt = w1_ref.dtype                       # f32 or bf16 (set in prepare_params)
    x = x_ref[...].astype(wdt)
    h1 = jnp.dot(x, w1_ref[...], preferred_element_type=jnp.float32) + b1_ref[...]
    h1 = jnp.maximum(h1, 0.0).astype(wdt)
    h2 = jnp.dot(h1, w2_ref[...], preferred_element_type=jnp.float32) + b2_ref[...]
    h2 = jnp.maximum(h2, 0.0).astype(wdt)
    logits = jnp.dot(h2, w3_ref[...], preferred_element_type=jnp.float32) + b3_ref[...]
    o_ref[...] = jax.nn.sigmoid(logits)


def prepare_params(params, *, use_bf16=False):
    """One-time parameter prep: pad the last layer to a lane-dense 128-wide
    output and (optionally) cast weights to bf16.  Call once, reuse across
    forward calls."""
    w1, b1, w2, b2, w3, b3 = params
    w3p = jnp.zeros((H2, OUT_PAD), jnp.float32).at[:, :1].set(w3)
    b3p = jnp.zeros((1, OUT_PAD), jnp.float32).at[:, :1].set(b3)
    wdt = jnp.bfloat16 if use_bf16 else jnp.float32
    return (w1.astype(wdt), b1.astype(jnp.float32),
            w2.astype(wdt), b2.astype(jnp.float32),
            w3p.astype(wdt), b3p.astype(jnp.float32))


def subject_discriminator(x, prepared_params, *, tb=128):
    """x: (B, FEATURES_DIM) float32.  Returns (B, 1) float32 in [0, 1].

    prepared_params must come from prepare_params()."""
    w1, b1, w2, b2, w3p, b3p = prepared_params
    B, F = x.shape
    assert F == FEATURES_DIM

    # Effective batch tile: multiple of 8 (sublane), capped by tb, and never
    # larger than the (padded) batch so tiny batches don't over-pad.
    tb_eff = min(tb, _round_up(B, 8))
    tb_eff = _round_up(tb_eff, 8)
    B_pad = _round_up(B, tb_eff)
    if B_pad != B:
        x = jnp.pad(x, ((0, B_pad - B), (0, 0)))

    grid = (B_pad // tb_eff,)

    itemsize = jnp.dtype(w1.dtype).itemsize
    cost = pl.CostEstimate(
        flops=2 * B_pad * (FEATURES_DIM * H1 + H1 * H2 + H2 * OUT_PAD),
        transcendentals=B_pad * OUT_PAD,
        bytes_accessed=(B_pad * FEATURES_DIM * 4
                        + (FEATURES_DIM * H1 + H1 * H2 + H2 * OUT_PAD) * itemsize
                        + B_pad * OUT_PAD * 4),
    )

    out = pl.pallas_call(
        _mlp_kernel,
        out_shape=jax.ShapeDtypeStruct((B_pad, OUT_PAD), jnp.float32),
        grid_spec=pltpu.PrefetchScalarGridSpec(
            num_scalar_prefetch=0,
            grid=grid,
            in_specs=[
                pl.BlockSpec((tb_eff, FEATURES_DIM), lambda i: (i, 0)),  # x tile
                pl.BlockSpec((FEATURES_DIM, H1), lambda i: (0, 0)),      # w1 (resident)
                pl.BlockSpec((1, H1), lambda i: (0, 0)),                 # b1
                pl.BlockSpec((H1, H2), lambda i: (0, 0)),                # w2 (resident)
                pl.BlockSpec((1, H2), lambda i: (0, 0)),                 # b2
                pl.BlockSpec((H2, OUT_PAD), lambda i: (0, 0)),           # w3 (padded)
                pl.BlockSpec((1, OUT_PAD), lambda i: (0, 0)),            # b3 (padded)
            ],
            out_specs=pl.BlockSpec((tb_eff, OUT_PAD), lambda i: (i, 0)),
        ),
        compiler_params=pltpu.CompilerParams(
            dimension_semantics=("parallel",),
        ),
        cost_estimate=cost,
    )(x, w1, b1, w2, b2, w3p, b3p)

    return out[:B, :1]


def init_params(key):
    """Deterministic init mimicking PyTorch Linear default (U[-1/sqrt(fan_in), +])."""
    ks = jax.random.split(key, 6)

    def lin(kw, kb, fan_in, fan_out):
        bound = 1.0 / jnp.sqrt(jnp.float32(fan_in))
        w = jax.random.uniform(kw, (fan_in, fan_out), jnp.float32, -bound, bound)
        b = jax.random.uniform(kb, (1, fan_out), jnp.float32, -bound, bound)
        return w, b

    w1, b1 = lin(ks[0], ks[1], FEATURES_DIM, H1)
    w2, b2 = lin(ks[2], ks[3], H1, H2)
    w3, b3 = lin(ks[4], ks[5], H2, 1)
    return (w1, b1, w2, b2, w3, b3)


def _reference(x, params):
    w1, b1, w2, b2, w3, b3 = params
    h1 = jnp.maximum(x @ w1 + b1, 0.0)
    h2 = jnp.maximum(h1 @ w2 + b2, 0.0)
    return jax.nn.sigmoid(h2 @ w3 + b3)


if __name__ == "__main__":
    key = jax.random.PRNGKey(0)
    kx, kx2, kp = jax.random.split(key, 3)

    params = init_params(kp)
    prepared = prepare_params(params)           # hoisted w3/b3 padding (f32 path)

    # Small batch, tile shrinks to fit (single grid step).
    B = 8
    x = jax.random.normal(kx, (B, FEATURES_DIM), jnp.float32)
    out = jax.block_until_ready(subject_discriminator(x, params=prepared) if False
                                else subject_discriminator(x, prepared))
    ref = _reference(x, params)
    assert out.shape == (B, 1)
    assert jnp.allclose(out, ref, atol=1e-5, rtol=1e-5)

    # Batch that is NOT a multiple of the tile -> exercises pad + slice path.
    B2 = 5
    x2 = jax.random.normal(kx2, (B2, FEATURES_DIM), jnp.float32)
    out2 = jax.block_until_ready(subject_discriminator(x2, prepared))
    ref2 = _reference(x2, params)
    assert out2.shape == (B2, 1)
    assert jnp.allclose(out2, ref2, atol=1e-5, rtol=1e-5)

    print("KERNEL_OK")
</pallas_src>

<mosaic_0001>
module attributes {stable_mosaic.version = 11 : i64} {
  func.func @_mlp_kernel(%arg0: i32, %arg1: memref<8x768xf32, #tpu.memory_space<vmem>>, %arg2: memref<768x768xf32, #tpu.memory_space<vmem>>, %arg3: memref<1x768xf32, #tpu.memory_space<vmem>>, %arg4: memref<768x256xf32, #tpu.memory_space<vmem>>, %arg5: memref<1x256xf32, #tpu.memory_space<vmem>>, %arg6: memref<256x128xf32, #tpu.memory_space<vmem>>, %arg7: memref<1x128xf32, #tpu.memory_space<vmem>>, %arg8: memref<8x128xf32, #tpu.memory_space<vmem>>) attributes {dimension_semantics = [#tpu.dimension_semantics<parallel>], iteration_bounds = array<i64: 1>, scalar_prefetch = 0 : i64, scratch_operands = 0 : i64, tpu.core_type = #tpu.core_type<tc>, window_params = [{transform_indices = @transform_0, window_bounds = array<i64: 8, 768>}, {pipeline_mode = #tpu.pipeline_mode<synchronous>, transform_indices = @transform_1, window_bounds = array<i64: 768, 768>}, {pipeline_mode = #tpu.pipeline_mode<synchronous>, transform_indices = @transform_2, window_bounds = array<i64: 1, 768>}, {pipeline_mode = #tpu.pipeline_mode<synchronous>, transform_indices = @transform_3, window_bounds = array<i64: 768, 256>}, {pipeline_mode = #tpu.pipeline_mode<synchronous>, transform_indices = @transform_4, window_bounds = array<i64: 1, 256>}, {pipeline_mode = #tpu.pipeline_mode<synchronous>, transform_indices = @transform_5, window_bounds = array<i64: 256, 128>}, {pipeline_mode = #tpu.pipeline_mode<synchronous>, transform_indices = @transform_6, window_bounds = array<i64: 1, 128>}, {transform_indices = @transform_7, window_bounds = array<i64: 8, 128>}]} {
    %c0 = arith.constant 0 : index
    %c0_0 = arith.constant 0 : index
    %0 = vector.load %arg1[%c0, %c0_0] : memref<8x768xf32, #tpu.memory_space<vmem>>, vector<8x768xf32>
    %c0_1 = arith.constant 0 : index
    %c0_2 = arith.constant 0 : index
    %1 = vector.load %arg2[%c0_1, %c0_2] : memref<768x768xf32, #tpu.memory_space<vmem>>, vector<768x768xf32>
    %cst = arith.constant dense<0.000000e+00> : vector<8x768xf32>
    %2 = tpu.matmul %0, %1, %cst {dimension_numbers = #tpu.dot_dimension_numbers<[1], [0], [0], [1], [0, 0, 1, 1], [], []>} : vector<8x768xf32>, vector<768x768xf32>, vector<8x768xf32> -> vector<8x768xf32>
    %c0_3 = arith.constant 0 : index
    %c0_4 = arith.constant 0 : index
    %3 = vector.load %arg3[%c0_3, %c0_4] : memref<1x768xf32, #tpu.memory_space<vmem>>, vector<1x768xf32>
    %4 = vector.broadcast %3 : vector<1x768xf32> to vector<8x768xf32>
    %5 = arith.addf %2, %4 : vector<8x768xf32>
    %cst_5 = arith.constant 0.000000e+00 : f32
    %6 = vector.broadcast %cst_5 : f32 to vector<8x768xf32>
    %7 = arith.maximumf %5, %6 : vector<8x768xf32>
    %c0_6 = arith.constant 0 : index
    %c0_7 = arith.constant 0 : index
    %8 = vector.load %arg4[%c0_6, %c0_7] : memref<768x256xf32, #tpu.memory_space<vmem>>, vector<768x256xf32>
    %cst_8 = arith.constant dense<0.000000e+00> : vector<8x256xf32>
    %9 = tpu.matmul %7, %8, %cst_8 {dimension_numbers = #tpu.dot_dimension_numbers<[1], [0], [0], [1], [0, 0, 1, 1], [], []>} : vector<8x768xf32>, vector<768x256xf32>, vector<8x256xf32> -> vector<8x256xf32>
    %c0_9 = arith.constant 0 : index
    %c0_10 = arith.constant 0 : index
    %10 = vector.load %arg5[%c0_9, %c0_10] : memref<1x256xf32, #tpu.memory_space<vmem>>, vector<1x256xf32>
    %11 = vector.broadcast %10 : vector<1x256xf32> to vector<8x256xf32>
    %12 = arith.addf %9, %11 : vector<8x256xf32>
    %cst_11 = arith.constant 0.000000e+00 : f32
    %13 = vector.broadcast %cst_11 : f32 to vector<8x256xf32>
    %14 = arith.maximumf %12, %13 : vector<8x256xf32>
    %c0_12 = arith.constant 0 : index
    %c0_13 = arith.constant 0 : index
    %15 = vector.load %arg6[%c0_12, %c0_13] : memref<256x128xf32, #tpu.memory_space<vmem>>, vector<256x128xf32>
    %cst_14 = arith.constant dense<0.000000e+00> : vector<8x128xf32>
    %16 = tpu.matmul %14, %15, %cst_14 {dimension_numbers = #tpu.dot_dimension_numbers<[1], [0], [0], [1], [0, 0, 1, 1], [], []>} : vector<8x256xf32>, vector<256x128xf32>, vector<8x128xf32> -> vector<8x128xf32>
    %c0_15 = arith.constant 0 : index
    %c0_16 = arith.constant 0 : index
    %17 = vector.load %arg7[%c0_15, %c0_16] : memref<1x128xf32, #tpu.memory_space<vmem>>, vector<1x128xf32>
    %18 = vector.broadcast %17 : vector<1x128xf32> to vector<8x128xf32>
    %19 = arith.addf %16, %18 : vector<8x128xf32>
    %20 = arith.negf %19 : vector<8x128xf32>
    %21 = math.exp %20 : vector<8x128xf32>
    %cst_17 = arith.constant 1.000000e+00 : f32
    %22 = vector.broadcast %cst_17 : f32 to vector<8x128xf32>
    %23 = arith.addf %22, %21 : vector<8x128xf32>
    %24 = arith.divf %22, %23 : vector<8x128xf32>
    %c0_18 = arith.constant 0 : index
    %c0_19 = arith.constant 0 : index
    %25 = vector.load %arg8[%c0_18, %c0_19] : memref<8x128xf32, #tpu.memory_space<vmem>>, vector<8x128xf32>
    tpu.vector_store %arg8[%c0_18, %c0_19], %24 {strides = array<i32>} : memref<8x128xf32, #tpu.memory_space<vmem>>, vector<8x128xf32>,
    return
  }
  func.func @transform_0(%arg0: i32) -> (i32, i32) {
    %c0_i32 = arith.constant 0 : i32
    %c0_i32_0 = arith.constant 0 : i32
    return %arg0, %c0_i32 : i32, i32
  }
  func.func @transform_1(%arg0: i32) -> (i32, i32) {
    %c0_i32 = arith.constant 0 : i32
    %c0_i32_0 = arith.constant 0 : i32
    %c0_i32_1 = arith.constant 0 : i32
    return %c0_i32, %c0_i32_0 : i32, i32
  }
  func.func @transform_2(%arg0: i32) -> (i32, i32) {
    %c0_i32 = arith.constant 0 : i32
    %c0_i32_0 = arith.constant 0 : i32
    %c0_i32_1 = arith.constant 0 : i32
    return %c0_i32, %c0_i32_0 : i32, i32
  }
  func.func @transform_3(%arg0: i32) -> (i32, i32) {
    %c0_i32 = arith.constant 0 : i32
    %c0_i32_0 = arith.constant 0 : i32
    %c0_i32_1 = arith.constant 0 : i32
    return %c0_i32, %c0_i32_0 : i32, i32
  }
  func.func @transform_4(%arg0: i32) -> (i32, i32) {
    %c0_i32 = arith.constant 0 : i32
    %c0_i32_0 = arith.constant 0 : i32
    %c0_i32_1 = arith.constant 0 : i32
    return %c0_i32, %c0_i32_0 : i32, i32
  }
  func.func @transform_5(%arg0: i32) -> (i32, i32) {
    %c0_i32 = arith.constant 0 : i32
    %c0_i32_0 = arith.constant 0 : i32
    %c0_i32_1 = arith.constant 0 : i32
    return %c0_i32, %c0_i32_0 : i32, i32
  }
  func.func @transform_6(%arg0: i32) -> (i32, i32) {
    %c0_i32 = arith.constant 0 : i32
    %c0_i32_0 = arith.constant 0 : i32
    %c0_i32_1 = arith.constant 0 : i32
    return %c0_i32, %c0_i32_0 : i32, i32
  }
  func.func @transform_7(%arg0: i32) -> (i32, i32) {
    %c0_i32 = arith.constant 0 : i32
    %c0_i32_0 = arith.constant 0 : i32
    return %arg0, %c0_i32 : i32, i32
  }
}

</mosaic_0001>

<bundles_post_ra>
// kernel: tpu_custom_call.1
= control target key start
LH: loop header
LB: loop body
LE: loop exit
PB: predicated region body
PF: predicated region fallthrough
CT: control target
= control target key end

     0   :  { %12 = vsyncpa [#allocation3], 0  ;;  %s3174_s0 = inlined_call_operand.hbm [shape: f32[8,768], index: 0, kind: input, shape index: {}]   ;;  %s3175_s1 = inlined_call_operand.hbm [shape: f32[768,768], index: 1, kind: input, shape index: {}]   ;;  %s3176_s2 = inlined_call_operand.hbm [shape: f32[1,768], index: 2, kind: input, shape index: {}]   ;;  %s3177_s3 = inlined_call_operand.hbm [shape: f32[768,256], index: 3, kind: input, shape index: {}]   ;;  %s3178_s4 = inlined_call_operand.hbm [shape: f32[1,256], index: 4, kind: input, shape index: {}]   ;;  %s3179_s5 = inlined_call_operand.hbm [shape: f32[256,128], index: 5, kind: input, shape index: {}]   ;;  %s3180_s6 = inlined_call_operand.hbm [shape: f32[1,128], index: 6, kind: input, shape index: {}]   ;;  %s3181_s7 = inlined_call_operand.hbm [shape: f32[8,128], index: 7, kind: output, shape index: {}]  }
   0x1   :  { %13 = vsyncpa [#allocation6], 0 }
   0x2   :  { %14 = vsyncpa [#allocation9], 0 }
   0x3   :  { %15 = vsyncpa [#allocation12], 0 }
   0x4   :  { %16 = vsyncpa [#allocation4], 0  ;;  %s2997_s24 = smov [#allocation5]   ;;  %s2811_s28 = scalar_lea.hbm %s3175_s1, 73728 }
   0x5   :  { %s32_s25 = sshll.u32 %s2997_s24, 4  ;;  %p2812_p0 = scmp.ne.s32.totalorder %s3175_s1, %s2811_s28  ;;  %s33_s25 = int_to_ptr.vmem [resolvable:$true] %s32_s25 }
   0x6   :  { %p2815_p1 = scmp.lt.u32.totalorder %s2811_s28, %s3175_s1 }
   0x8   :  { %p2817_p2 = pnand %p2815_p1, %p2812_p0 }
   0xa   :  { %2820 = shalt.err (!%p2817_p2)
}
   0xb   :  { %s2821_s10 = scalar_lea.vmem %s33_s25, 73728  ;;  %p2826_p4 = scmp.lt.s32.totalorder %s33_s25, %s33_s25 }
   0xc   :  { %p2822_p3 = scmp.ne.s32.totalorder %s33_s25, %s2821_s10  ;;  %p2827_p5 = scmp.lt.s32.totalorder %s2821_s10, %s2821_s10 }
   0xe   :  { %p2828_p6 = por %p2827_p5, %p2826_p4 }
  0x10   :  { %p2829_p7 = pnand %p2828_p6, %p2822_p3 }
  0x12   :  { %2832 = shalt.err (!%p2829_p7)
}
  0x13   :  { %s2998_s11 = smov 768   ;;  %s2999_s12 = smov 48  }
  0x14   :  { %38 = dma.hbm_to_vmem [thread:$0]  %s3175_s1, 73728, %s33_s25, [#allocation6], %s2998_s11, %s2998_s11, %s2999_s12  }
  0x15   :  { %s3000_s15 = smov [#allocation8]   ;;  %s2833_s19 = scalar_lea.hbm %s3177_s3, 24576 }
  0x16   :  { %s54_s16 = sshll.u32 %s3000_s15, 4  ;;  %p2834_p8 = scmp.ne.s32.totalorder %s3177_s3, %s2833_s19  ;;  %s55_s16 = int_to_ptr.vmem [resolvable:$true] %s54_s16 }
  0x17   :  { %p2837_p9 = scmp.lt.u32.totalorder %s2833_s19, %s3177_s3 }
  0x19   :  { %p2839_p10 = pnand %p2837_p9, %p2834_p8 }
  0x1b   :  { %2842 = shalt.err (!%p2839_p10)
}
  0x1c   :  { %s2843_s24 = scalar_lea.vmem %s55_s16, 24576  ;;  %p2848_p12 = scmp.lt.s32.totalorder %s55_s16, %s55_s16 }
  0x1d   :  { %p2844_p11 = scmp.ne.s32.totalorder %s55_s16, %s2843_s24  ;;  %p2849_p13 = scmp.lt.s32.totalorder %s2843_s24, %s2843_s24 }
  0x1f   :  { %p2850_p0 = por %p2849_p13, %p2848_p12 }
  0x21   :  { %p2851_p1 = pnand %p2850_p0, %p2844_p11 }
  0x23   :  { %2854 = shalt.err (!%p2851_p1)
}
  0x24   :  { %s3001_s1 = smov 256   ;;  %s3002_s25 = smov 16  }
  0x25   :  { %60 = dma.hbm_to_vmem [thread:$0]  %s3177_s3, 24576, %s55_s16, [#allocation9], %s3001_s1, %s3001_s1, %s3002_s25  }
  0x26   :  { %s3003_s28 = smov [#allocation11]   ;;  %s2855_s9 = scalar_lea.hbm %s3179_s5, 4096 }
  0x27   :  { %s76_s29 = sshll.u32 %s3003_s28, 4  ;;  %p2856_p2 = scmp.ne.s32.totalorder %s3179_s5, %s2855_s9  ;;  %s77_s29 = int_to_ptr.vmem [resolvable:$true] %s76_s29 }
  0x28   :  { %p2859_p3 = scmp.lt.u32.totalorder %s2855_s9, %s3179_s5 }
  0x2a   :  { %p2861_p4 = pnand %p2859_p3, %p2856_p2 }
  0x2c   :  { %2864 = shalt.err (!%p2861_p4)
}
  0x2d   :  { %s2865_s14 = scalar_lea.vmem %s77_s29, 4096  ;;  %p2870_p6 = scmp.lt.s32.totalorder %s77_s29, %s77_s29 }
  0x2e   :  { %p2866_p5 = scmp.ne.s32.totalorder %s77_s29, %s2865_s14  ;;  %p2871_p7 = scmp.lt.s32.totalorder %s2865_s14, %s2865_s14 }
  0x30   :  { %p2872_p8 = por %p2871_p7, %p2870_p6 }
  0x32   :  { %p2873_p9 = pnand %p2872_p8, %p2866_p5 }
  0x34   :  { %2876 = shalt.err (!%p2873_p9)
}
  0x35   :  { %s3004_s3 = smov 128   ;;  %s3005_s15 = smov 8  }
  0x36   :  { %82 = dma.hbm_to_vmem [thread:$0]  %s3179_s5, 4096, %s77_s29, [#allocation12], %s3004_s3, %s3004_s3, %s3005_s15  }
  0x37   :  { %s3006_s18 = smov [#allocation2]   ;;  %s3007_s20 = smov [#allocation7]  }
  0x38   :  { %s23_s19 = sshll.u32 %s3006_s18, 4  ;;  %s45_s21 = sshll.u32 %s3007_s20, 4  ;;  %s24_s19 = int_to_ptr.vmem [resolvable:$true] %s23_s19  ;;  %s46_s21 = int_to_ptr.vmem [resolvable:$true] %s45_s21 }
  0x39   :  { %s2877_s24 = scalar_lea.hbm %s3174_s0, 768 }
  0x3a   :  { %p2878_p10 = scmp.ne.s32.totalorder %s3174_s0, %s2877_s24  ;;  %p2881_p11 = scmp.lt.u32.totalorder %s2877_s24, %s3174_s0 }
  0x3c   :  { %p2883_p12 = pnand %p2881_p11, %p2878_p10 }
  0x3e   :  { %2886 = shalt.err (!%p2883_p12)
}
  0x3f   :  { %s2887_s5 = scalar_lea.vmem %s24_s19, 768  ;;  %p2892_p0 = scmp.lt.s32.totalorder %s24_s19, %s24_s19 }
  0x40   :  { %p2888_p13 = scmp.ne.s32.totalorder %s24_s19, %s2887_s5  ;;  %p2893_p1 = scmp.lt.s32.totalorder %s2887_s5, %s2887_s5 }
  0x42   :  { %p2894_p2 = por %p2893_p1, %p2892_p0 }
  0x44   :  { %p2895_p3 = pnand %p2894_p2, %p2888_p13 }
  0x46   :  { %2898 = shalt.err (!%p2895_p3)
}
  0x47   :  { %26 = dma.hbm_to_vmem [thread:$0]  %s3174_s0, 768, %s24_s19, [#allocation3]  }
  0x48   :  { %s2899_s9 = scalar_lea.hbm %s3176_s2, 96 }
  0x49   :  { %p2900_p4 = scmp.ne.s32.totalorder %s3176_s2, %s2899_s9  ;;  %p2903_p5 = scmp.lt.u32.totalorder %s2899_s9, %s3176_s2 }
  0x4b   :  { %p2905_p6 = pnand %p2903_p5, %p2900_p4 }
  0x4d   :  { %2908 = shalt.err (!%p2905_p6)
}
  0x4e   :  { %s2909_s14 = scalar_lea.vmem %s46_s21, 96  ;;  %p2914_p8 = scmp.lt.s32.totalorder %s46_s21, %s46_s21 }
  0x4f   :  { %p2910_p7 = scmp.ne.s32.totalorder %s46_s21, %s2909_s14  ;;  %p2915_p9 = scmp.lt.s32.totalorder %s2909_s14, %s2909_s14 }
  0x51   :  { %p2916_p10 = por %p2915_p9, %p2914_p8 }
  0x53   :  { %p2917_p11 = pnand %p2916_p10, %p2910_p7 }
  0x55   :  { %2920 = shalt.err (!%p2917_p11)
}
  0x56   :  { %48 = dma.hbm_to_vmem [thread:$0]  %s3176_s2, 96, %s46_s21, [#allocation6]  }
  0x57   :  { %s3008_s15 = smov [#allocation10]   ;;  %s3009_s17 = smov [#allocation13]  }
  0x58   :  { %s67_s16 = sshll.u32 %s3008_s15, 4  ;;  %s89_s18 = sshll.u32 %s3009_s17, 4  ;;  %s68_s16 = int_to_ptr.vmem [resolvable:$true] %s67_s16  ;;  %s90_s18 = int_to_ptr.vmem [resolvable:$true] %s89_s18 }
  0x59   :  { %s2921_s22 = scalar_lea.hbm %s3178_s4, 32 }
  0x5a   :  { %p2922_p12 = scmp.ne.s32.totalorder %s3178_s4, %s2921_s22  ;;  %p2925_p13 = scmp.lt.u32.totalorder %s2921_s22, %s3178_s4 }
  0x5c   :  { %p2927_p0 = pnand %p2925_p13, %p2922_p12 }
  0x5e   :  { %2930 = shalt.err (!%p2927_p0)
}
  0x5f   :  { %s2931_s2 = scalar_lea.vmem %s68_s16, 32  ;;  %p2936_p2 = scmp.lt.s32.totalorder %s68_s16, %s68_s16 }
  0x60   :  { %p2932_p1 = scmp.ne.s32.totalorder %s68_s16, %s2931_s2  ;;  %p2937_p3 = scmp.lt.s32.totalorder %s2931_s2, %s2931_s2 }
  0x62   :  { %p2938_p4 = por %p2937_p3, %p2936_p2 }
  0x64   :  { %p2939_p5 = pnand %p2938_p4, %p2932_p1 }
  0x66   :  { %2942 = shalt.err (!%p2939_p5)
}
  0x67   :  { %70 = dma.hbm_to_vmem [thread:$0]  %s3178_s4, 32, %s68_s16, [#allocation9]  }
  0x68   :  { %s2943_s28 = scalar_lea.hbm %s3180_s6, 16 }
  0x69   :  { %p2944_p6 = scmp.ne.s32.totalorder %s3180_s6, %s2943_s28  ;;  %p2947_p7 = scmp.lt.u32.totalorder %s2943_s28, %s3180_s6 }
  0x6b   :  { %p2949_p8 = pnand %p2947_p7, %p2944_p6 }
  0x6d   :  { %2952 = shalt.err (!%p2949_p8)
}
  0x6e   :  { %s2953_s10 = scalar_lea.vmem %s90_s18, 16  ;;  %s2957_s11 = scalar_lea.vmem %s90_s18, 32 }
  0x6f   :  { %p2954_p9 = scmp.ne.s32.totalorder %s90_s18, %s2953_s10  ;;  %p2958_p10 = scmp.lt.s32.totalorder %s90_s18, %s90_s18 }
  0x70   :  { %p2959_p11 = scmp.lt.s32.totalorder %s2957_s11, %s2953_s10 }
  0x72   :  { %p2960_p12 = por %p2959_p11, %p2958_p10 }
  0x74   :  { %p2961_p13 = pnand %p2960_p12, %p2954_p9 }
  0x76   :  { %2964 = shalt.err (!%p2961_p13)
}
  0x77   :  { %92 = dma.hbm_to_vmem [thread:$0]  %s3180_s6, 16, %s90_s18, [#allocation12]  }
  0x78   :  { %2987 = dma.done.wait [#allocation3], 768  }
  0x79   :  { %2988 = vsyncadd [#allocation3], 4294966528 }
  0x7a   :  { %2989 = dma.done.wait [#allocation6], 73824  }
  0x7b   :  { %2990 = vsyncadd [#allocation6], 4294893472 }
  0x7c   :  { %2991 = dma.done.wait [#allocation9], 24608  }
  0x7d   :  { %2992 = vsyncadd [#allocation9], 4294942688 }
  0x7e   :  { %2993 = dma.done.wait [#allocation12], 4112  }
  0x7f   :  { %2994 = vsyncadd [#allocation12], 4294963184  ;;  %v121_v0 = vld [vmem:[#allocation5 + $0x8] sm:$0xff]  ;;  %v127_v1 = vld [vmem:[#allocation5 + $0x38] sm:$0xff]  ;;  %s3010_s6 = smov [#allocation14]  }
  0x80   :  { %v120_v2 = vld [vmem:[#allocation5] sm:$0xff]  ;;  %v1963_v3 = vpack.c.bf16 %v127_v1, %v121_v0  ;;  %v126_v4 = vld [vmem:[#allocation5 + $0x30] sm:$0xff]  ;;  %v123_v5 = vld [vmem:[#allocation5 + $0x18] sm:$0xff]  ;;  %s1914_s13 = sshll.u32 %s3010_s6, 4  ;;  %s1915_s13 = int_to_ptr.vmem [resolvable:$true] %s1914_s13 }
  0x81   :  { %v129_v6 = vld [vmem:[#allocation5 + $0x48] sm:$0xff]  ;;  %v1965_v7 = vpack.c.bf16 %v126_v4, %v120_v2  ;;  %v122_v9 = vld [vmem:[#allocation5 + $0x10] sm:$0xff]  ;;  %v128_v10 = vld [vmem:[#allocation5 + $0x40] sm:$0xff]  ;;  %s2965_s14 = scalar_lea.vmem %s1915_s13, 128  ;;  %p2970_p1 = scmp.lt.s32.totalorder %s1915_s13, %s1915_s13 }
  0x82   :  { %v2155_v8 = vpack.c.bf16 %v129_v6, %v123_v5  ;;  %v133_v11 = vld [vmem:[#allocation5 + $0x68] sm:$0xff]  ;;  %1964 = vmatprep.subr.bf16.mxu0 %v1963_v3  ;;  %v2157_v12 = vpack.c.bf16 %v128_v10, %v122_v9  ;;  %v139_v13 = vld [vmem:[#allocation5 + $0x98] sm:$0xff]  ;;  %v132_v14 = vld [vmem:[#allocation5 + $0x60] sm:$0xff]  ;;  %p2966_p0 = scmp.ne.s32.totalorder %s1915_s13, %s2965_s14  ;;  %p2971_p2 = scmp.lt.s32.totalorder %s2965_s14, %s2965_s14 }
  0x83   :  { %v138_v15 = vld [vmem:[#allocation5 + $0x90] sm:$0xff]  ;;  %1966 = vmatpush1.bf16.msra.mxu0 %v1965_v7  ;;  %v1967_v16 = vpack.c.bf16 %v139_v13, %v133_v11  ;;  %v135_v18 = vld [vmem:[#allocation5 + $0x78] sm:$0xff]  ;;  %v141_v19 = vld [vmem:[#allocation5 + $0xa8] sm:$0xff] }
  0x84   :  { %2156 = vmatprep.subr.bf16.mxu1 %v2155_v8  ;;  %v1969_v17 = vpack.c.bf16 %v138_v15, %v132_v14  ;;  %v134_v20 = vld [vmem:[#allocation5 + $0x70] sm:$0xff]  ;;  %v2159_v21 = vpack.c.bf16 %v141_v19, %v135_v18  ;;  %v140_v22 = vld [vmem:[#allocation5 + $0xa0] sm:$0xff]  ;;  %v145_v23 = vld [vmem:[#allocation5 + $0xc8] sm:$0xff]  ;;  %p2972_p3 = por %p2971_p2, %p2970_p1 }
  0x85   :  { %2158 = vmatpush1.bf16.msra.mxu1 %v2157_v12  ;;  %v151_v24 = vld [vmem:[#allocation5 + $0xf8] sm:$0xff]  ;;  %1968 = vmatprep.subr.bf16.mxu0 %v1967_v16  ;;  %v2161_v25 = vpack.c.bf16 %v140_v22, %v134_v20  ;;  %v144_v27 = vld [vmem:[#allocation5 + $0xc0] sm:$0xff]  ;;  %v150_v28 = vld [vmem:[#allocation5 + $0xf0] sm:$0xff] }
  0x86   :  { %v1971_v26 = vpack.c.bf16 %v151_v24, %v145_v23  ;;  %v147_v29 = vld [vmem:[#allocation5 + $0xd8] sm:$0xff]  ;;  %2160 = vmatprep.subr.bf16.mxu1 %v2159_v21  ;;  %v153_v30 = vld [vmem:[#allocation5 + $0x108] sm:$0xff]  ;;  %v146_v31 = vld [vmem:[#allocation5 + $0xd0] sm:$0xff]  ;;  %v1973_v33 = vpack.c.bf16 %v150_v28, %v144_v27  ;;  %p2973_p4 = pnand %p2972_p3, %p2966_p0 }
  0x87   :  { %v152_v32 = vld [vmem:[#allocation5 + $0x100] sm:$0xff]  ;;  %1970 = vmatpush1.bf16.msra.mxu0 %v1969_v17  ;;  %v2163_v34 = vpack.c.bf16 %v153_v30, %v147_v29  ;;  %v157_v35 = vld [vmem:[#allocation5 + $0x128] sm:$0xff]  ;;  %v163_v36 = vld [vmem:[#allocation5 + $0x158] sm:$0xff] }
  0x88   :  { %v156_v37 = vld [vmem:[#allocation5 + $0x120] sm:$0xff]  ;;  %1972 = vmatprep.subr.bf16.mxu0 %v1971_v26  ;;  %v2165_v38 = vpack.c.bf16 %v152_v32, %v146_v31  ;;  %v1975_v39 = vpack.c.bf16 %v163_v36, %v157_v35  ;;  %v162_v40 = vld [vmem:[#allocation5 + $0x150] sm:$0xff]  ;;  %v159_v41 = vld [vmem:[#allocation5 + $0x138] sm:$0xff] }
  0x89   :  { %2162 = vmatpush1.bf16.msra.mxu1 %v2161_v25  ;;  %v165_v42 = vld [vmem:[#allocation5 + $0x168] sm:$0xff]  ;;  %v158_v44 = vld [vmem:[#allocation5 + $0x130] sm:$0xff]  ;;  %v164_v45 = vld [vmem:[#allocation5 + $0x160] sm:$0xff]  ;;  %v1977_v48 = vpack.c.bf16 %v162_v40, %v156_v37 }
  0x8a   :  { %2164 = vmatprep.subr.bf16.mxu1 %v2163_v34  ;;  %v2167_v43 = vpack.c.bf16 %v165_v42, %v159_v41  ;;  %v169_v46 = vld [vmem:[#allocation5 + $0x188] sm:$0xff]  ;;  %v175_v47 = vld [vmem:[#allocation5 + $0x1b8] sm:$0xff]  ;;  %v2169_v51 = vpack.c.bf16 %v164_v45, %v158_v44  ;;  %v168_v53 = vld [vmem:[#allocation5 + $0x180] sm:$0xff] }
  0x8b   :  { %1974 = vmatpush1.bf16.msra.mxu0 %v1973_v33  ;;  %v171_v49 = vld [vmem:[#allocation5 + $0x198] sm:$0xff]  ;;  %v177_v50 = vld [vmem:[#allocation5 + $0x1c8] sm:$0xff]  ;;  %v1979_v52 = vpack.c.bf16 %v175_v47, %v169_v46  ;;  %v174_v54 = vld [vmem:[#allocation5 + $0x1b0] sm:$0xff] }
  0x8c   :  { %1976 = vmatprep.subr.bf16.mxu0 %v1975_v39  ;;  %v170_v55 = vld [vmem:[#allocation5 + $0x190] sm:$0xff]  ;;  %v2171_v56 = vpack.c.bf16 %v177_v50, %v171_v49  ;;  %v176_v57 = vld [vmem:[#allocation5 + $0x1c0] sm:$0xff]  ;;  %v181_v58 = vld [vmem:[#allocation5 + $0x1e8] sm:$0xff]  ;;  %v1981_v62 = vpack.c.bf16 %v174_v54, %v168_v53 }
  0x8d   :  { %2166 = vmatpush1.bf16.msra.mxu1 %v2165_v38  ;;  %v187_v59 = vld [vmem:[#allocation5 + $0x218] sm:$0xff]  ;;  %v189_v61 = vld [vmem:[#allocation5 + $0x228] sm:$0xff]  ;;  %v2173_v63 = vpack.c.bf16 %v176_v57, %v170_v55  ;;  %v180_v1 = vld [vmem:[#allocation5 + $0x1e0] sm:$0xff] }
  0x8e   :  { %2168 = vmatprep.subr.bf16.mxu1 %v2167_v43  ;;  %v183_v60 = vld [vmem:[#allocation5 + $0x1f8] sm:$0xff]  ;;  %v1983_v0 = vpack.c.bf16 %v187_v59, %v181_v58  ;;  %v186_v2 = vld [vmem:[#allocation5 + $0x210] sm:$0xff]  ;;  %v188_v5 = vld [vmem:[#allocation5 + $0x220] sm:$0xff] }
  0x8f   :  { %1978 = vmatpush1.bf16.msra.mxu0 %v1977_v48  ;;  %v182_v3 = vld [vmem:[#allocation5 + $0x1f0] sm:$0xff]  ;;  %v2175_v4 = vpack.c.bf16 %v189_v61, %v183_v60  ;;  %v193_v6 = vld [vmem:[#allocation5 + $0x248] sm:$0xff]  ;;  %v199_v7 = vld [vmem:[#allocation5 + $0x278] sm:$0xff]  ;;  %v1985_v10 = vpack.c.bf16 %v186_v2, %v180_v1 }
  0x90   :  { %1980 = vmatprep.subr.bf16.mxu0 %v1979_v52  ;;  %v195_v8 = vld [vmem:[#allocation5 + $0x258] sm:$0xff]  ;;  %v201_v9 = vld [vmem:[#allocation5 + $0x288] sm:$0xff]  ;;  %v2177_v11 = vpack.c.bf16 %v188_v5, %v182_v3  ;;  %v1987_v12 = vpack.c.bf16 %v199_v7, %v193_v6  ;;  %v192_v13 = vld [vmem:[#allocation5 + $0x240] sm:$0xff] }
  0x91   :  { %2170 = vmatpush1.bf16.msra.mxu1 %v2169_v51  ;;  %v198_v14 = vld [vmem:[#allocation5 + $0x270] sm:$0xff]  ;;  %v2179_v16 = vpack.c.bf16 %v201_v9, %v195_v8  ;;  %v200_v17 = vld [vmem:[#allocation5 + $0x280] sm:$0xff]  ;;  %v205_v18 = vld [vmem:[#allocation5 + $0x2a8] sm:$0xff] }
  0x92   :  { %2172 = vmatprep.subr.bf16.mxu1 %v2171_v56  ;;  %v194_v15 = vld [vmem:[#allocation5 + $0x250] sm:$0xff]  ;;  %v211_v19 = vld [vmem:[#allocation5 + $0x2d8] sm:$0xff]  ;;  %v213_v21 = vld [vmem:[#allocation5 + $0x2e8] sm:$0xff]  ;;  %v1989_v22 = vpack.c.bf16 %v198_v14, %v192_v13 }
  0x93   :  { %1982 = vmatpush1.bf16.msra.mxu0 %v1981_v62  ;;  %v207_v20 = vld [vmem:[#allocation5 + $0x2b8] sm:$0xff]  ;;  %v2181_v23 = vpack.c.bf16 %v200_v17, %v194_v15  ;;  %v1991_v24 = vpack.c.bf16 %v211_v19, %v205_v18  ;;  %v204_v25 = vld [vmem:[#allocation5 + $0x2a0] sm:$0xff]  ;;  %v210_v26 = vld [vmem:[#allocation5 + $0x2d0] sm:$0xff] }
  0x94   :  { %1984 = vmatprep.subr.bf16.mxu0 %v1983_v0  ;;  %v206_v27 = vld [vmem:[#allocation5 + $0x2b0] sm:$0xff]  ;;  %v2183_v28 = vpack.c.bf16 %v213_v21, %v207_v20  ;;  %v212_v29 = vld [vmem:[#allocation5 + $0x2e0] sm:$0xff]  ;;  %v217_v30 = vld [vmem:[#allocation5 + $0x308] sm:$0xff]  ;;  %v1993_v34 = vpack.c.bf16 %v210_v26, %v204_v25 }
  0x95   :  { %2174 = vmatpush1.bf16.msra.mxu1 %v2173_v63  ;;  %v223_v31 = vld [vmem:[#allocation5 + $0x338] sm:$0xff]  ;;  %v225_v33 = vld [vmem:[#allocation5 + $0x348] sm:$0xff]  ;;  %v2185_v35 = vpack.c.bf16 %v212_v29, %v206_v27  ;;  %v216_v37 = vld [vmem:[#allocation5 + $0x300] sm:$0xff] }
  0x96   :  { %2176 = vmatprep.subr.bf16.mxu1 %v2175_v4  ;;  %v219_v32 = vld [vmem:[#allocation5 + $0x318] sm:$0xff]  ;;  %v1995_v36 = vpack.c.bf16 %v223_v31, %v217_v30  ;;  %v222_v38 = vld [vmem:[#allocation5 + $0x330] sm:$0xff]  ;;  %v224_v41 = vld [vmem:[#allocation5 + $0x340] sm:$0xff] }
  0x97   :  { %1986 = vmatpush1.bf16.msra.mxu0 %v1985_v10  ;;  %v218_v39 = vld [vmem:[#allocation5 + $0x310] sm:$0xff]  ;;  %v2187_v40 = vpack.c.bf16 %v225_v33, %v219_v32  ;;  %v229_v42 = vld [vmem:[#allocation5 + $0x368] sm:$0xff]  ;;  %v235_v43 = vld [vmem:[#allocation5 + $0x398] sm:$0xff]  ;;  %v1997_v46 = vpack.c.bf16 %v222_v38, %v216_v37 }
  0x98   :  { %1988 = vmatprep.subr.bf16.mxu0 %v1987_v12  ;;  %v231_v44 = vld [vmem:[#allocation5 + $0x378] sm:$0xff]  ;;  %v237_v45 = vld [vmem:[#allocation5 + $0x3a8] sm:$0xff]  ;;  %v2189_v47 = vpack.c.bf16 %v224_v41, %v218_v39  ;;  %v1999_v48 = vpack.c.bf16 %v235_v43, %v229_v42  ;;  %v228_v49 = vld [vmem:[#allocation5 + $0x360] sm:$0xff] }
  0x99   :  { %2178 = vmatpush1.bf16.msra.mxu1 %v2177_v11  ;;  %v234_v50 = vld [vmem:[#allocation5 + $0x390] sm:$0xff]  ;;  %v2191_v52 = vpack.c.bf16 %v237_v45, %v231_v44  ;;  %v236_v53 = vld [vmem:[#allocation5 + $0x3a0] sm:$0xff]  ;;  %v241_v54 = vld [vmem:[#allocation5 + $0x3c8] sm:$0xff] }
  0x9a   :  { %2180 = vmatprep.subr.bf16.mxu1 %v2179_v16  ;;  %v230_v51 = vld [vmem:[#allocation5 + $0x370] sm:$0xff]  ;;  %v247_v55 = vld [vmem:[#allocation5 + $0x3f8] sm:$0xff]  ;;  %v249_v57 = vld [vmem:[#allocation5 + $0x408] sm:$0xff]  ;;  %v2001_v58 = vpack.c.bf16 %v234_v50, %v228_v49 }
  0x9b   :  { %1990 = vmatpush1.bf16.msra.mxu0 %v1989_v22  ;;  %v243_v56 = vld [vmem:[#allocation5 + $0x3d8] sm:$0xff]  ;;  %v2193_v59 = vpack.c.bf16 %v236_v53, %v230_v51  ;;  %v2003_v60 = vpack.c.bf16 %v247_v55, %v241_v54  ;;  %v240_v61 = vld [vmem:[#allocation5 + $0x3c0] sm:$0xff]  ;;  %v246_v62 = vld [vmem:[#allocation5 + $0x3f0] sm:$0xff] }
  0x9c   :  { %1992 = vmatprep.subr.bf16.mxu0 %v1991_v24  ;;  %v242_v63 = vld [vmem:[#allocation5 + $0x3d0] sm:$0xff]  ;;  %v2195_v0 = vpack.c.bf16 %v249_v57, %v243_v56  ;;  %v248_v1 = vld [vmem:[#allocation5 + $0x400] sm:$0xff]  ;;  %v253_v2 = vld [vmem:[#allocation5 + $0x428] sm:$0xff]  ;;  %v2005_v6 = vpack.c.bf16 %v246_v62, %v240_v61 }
  0x9d   :  { %2182 = vmatpush1.bf16.msra.mxu1 %v2181_v23  ;;  %v259_v3 = vld [vmem:[#allocation5 + $0x458] sm:$0xff]  ;;  %v261_v5 = vld [vmem:[#allocation5 + $0x468] sm:$0xff]  ;;  %v252_v7 = vld [vmem:[#allocation5 + $0x420] sm:$0xff]  ;;  %v2197_v8 = vpack.c.bf16 %v248_v1, %v242_v63 }
  0x9e   :  { %2184 = vmatprep.subr.bf16.mxu1 %v2183_v28  ;;  %v255_v4 = vld [vmem:[#allocation5 + $0x438] sm:$0xff]  ;;  %v2007_v9 = vpack.c.bf16 %v259_v3, %v253_v2  ;;  %v258_v10 = vld [vmem:[#allocation5 + $0x450] sm:$0xff]  ;;  %v260_v12 = vld [vmem:[#allocation5 + $0x460] sm:$0xff] }
  0x9f   :  { %1994 = vmatpush1.bf16.msra.mxu0 %v1993_v34  ;;  %v254_v11 = vld [vmem:[#allocation5 + $0x430] sm:$0xff]  ;;  %v2199_v13 = vpack.c.bf16 %v261_v5, %v255_v4  ;;  %v265_v14 = vld [vmem:[#allocation5 + $0x488] sm:$0xff]  ;;  %v271_v15 = vld [vmem:[#allocation5 + $0x4b8] sm:$0xff]  ;;  %v2009_v19 = vpack.c.bf16 %v258_v10, %v252_v7 }
  0xa0   :  { %1996 = vmatprep.subr.bf16.mxu0 %v1995_v36  ;;  %v115_v16 = vld [vmem:[#allocation2 + $0x8] sm:$0xff]  ;;  %v273_v18 = vld [vmem:[#allocation5 + $0x4c8] sm:$0xff]  ;;  %v2201_v20 = vpack.c.bf16 %v260_v12, %v254_v11  ;;  %v2011_v21 = vpack.c.bf16 %v271_v15, %v265_v14  ;;  %v264_v22 = vld [vmem:[#allocation5 + $0x480] sm:$0xff] }
  0xa1   :  { %2186 = vmatpush1.bf16.msra.mxu1 %v2185_v35  ;;  %v267_v17 = vld [vmem:[#allocation5 + $0x498] sm:$0xff]  ;;  %792 = vmatprep.mubr.f32.mxu0 %v115_v16  ;;  %v270_v23 = vld [vmem:[#allocation5 + $0x4b0] sm:$0xff]  ;;  %v272_v26 = vld [vmem:[#allocation5 + $0x4c0] sm:$0xff] }
  0xa2   :  { %2188 = vmatprep.subr.bf16.mxu1 %v2187_v40  ;;  %1005 = vmatprep.mubr.f32.mxu1 %v115_v16  ;;  %v266_v24 = vld [vmem:[#allocation5 + $0x490] sm:$0xff]  ;;  %v2203_v25 = vpack.c.bf16 %v273_v18, %v267_v17  ;;  %v277_v27 = vld [vmem:[#allocation5 + $0x4e8] sm:$0xff]  ;;  %v283_v28 = vld [vmem:[#allocation5 + $0x518] sm:$0xff]  ;;  %v2013_v31 = vpack.c.bf16 %v270_v23, %v264_v22 }
  0xa3   :  { %1998 = vmatpush1.bf16.msra.mxu0 %v1997_v46  ;;  %v279_v29 = vld [vmem:[#allocation5 + $0x4f8] sm:$0xff]  ;;  %v285_v30 = vld [vmem:[#allocation5 + $0x528] sm:$0xff]  ;;  %v2205_v32 = vpack.c.bf16 %v272_v26, %v266_v24  ;;  %v2015_v33 = vpack.c.bf16 %v283_v28, %v277_v27  ;;  %v276_v34 = vld [vmem:[#allocation5 + $0x4e0] sm:$0xff] }
  0xa4   :  { %2000 = vmatprep.subr.bf16.mxu0 %v1999_v48  ;;  %v282_v35 = vld [vmem:[#allocation5 + $0x510] sm:$0xff]  ;;  %v2207_v37 = vpack.c.bf16 %v285_v30, %v279_v29  ;;  %v284_v38 = vld [vmem:[#allocation5 + $0x520] sm:$0xff]  ;;  %v289_v39 = vld [vmem:[#allocation5 + $0x548] sm:$0xff] }
  0xa5   :  { %2190 = vmatpush1.bf16.msra.mxu1 %v2189_v47  ;;  %v278_v36 = vld [vmem:[#allocation5 + $0x4f0] sm:$0xff]  ;;  %v295_v40 = vld [vmem:[#allocation5 + $0x578] sm:$0xff]  ;;  %v297_v42 = vld [vmem:[#allocation5 + $0x588] sm:$0xff]  ;;  %v2017_v43 = vpack.c.bf16 %v282_v35, %v276_v34 }
  0xa6   :  { %2192 = vmatprep.subr.bf16.mxu1 %v2191_v52  ;;  %v291_v41 = vld [vmem:[#allocation5 + $0x558] sm:$0xff]  ;;  %v2209_v44 = vpack.c.bf16 %v284_v38, %v278_v36  ;;  %v2019_v45 = vpack.c.bf16 %v295_v40, %v289_v39  ;;  %v288_v46 = vld [vmem:[#allocation5 + $0x540] sm:$0xff]  ;;  %v294_v47 = vld [vmem:[#allocation5 + $0x570] sm:$0xff] }
  0xa7   :  { %2002 = vmatpush1.bf16.msra.mxu0 %v2001_v58  ;;  %v290_v48 = vld [vmem:[#allocation5 + $0x550] sm:$0xff]  ;;  %v2211_v49 = vpack.c.bf16 %v297_v42, %v291_v41  ;;  %v296_v50 = vld [vmem:[#allocation5 + $0x580] sm:$0xff]  ;;  %v301_v51 = vld [vmem:[#allocation5 + $0x5a8] sm:$0xff]  ;;  %v2021_v55 = vpack.c.bf16 %v294_v47, %v288_v46 }
  0xa8   :  { %2004 = vmatprep.subr.bf16.mxu0 %v2003_v60  ;;  %v307_v52 = vld [vmem:[#allocation5 + $0x5d8] sm:$0xff]  ;;  %v309_v54 = vld [vmem:[#allocation5 + $0x5e8] sm:$0xff]  ;;  %v2213_v56 = vpack.c.bf16 %v296_v50, %v290_v48  ;;  %v300_v58 = vld [vmem:[#allocation5 + $0x5a0] sm:$0xff] }
  0xa9   :  { %2194 = vmatpush1.bf16.msra.mxu1 %v2193_v59  ;;  %v303_v53 = vld [vmem:[#allocation5 + $0x5b8] sm:$0xff]  ;;  %v2023_v57 = vpack.c.bf16 %v307_v52, %v301_v51  ;;  %v306_v59 = vld [vmem:[#allocation5 + $0x5d0] sm:$0xff]  ;;  %v308_v62 = vld [vmem:[#allocation5 + $0x5e0] sm:$0xff] }
  0xaa   :  { %2196 = vmatprep.subr.bf16.mxu1 %v2195_v0  ;;  %v302_v60 = vld [vmem:[#allocation5 + $0x5b0] sm:$0xff]  ;;  %v2215_v61 = vpack.c.bf16 %v309_v54, %v303_v53  ;;  %v313_v63 = vld [vmem:[#allocation5 + $0x608] sm:$0xff]  ;;  %v319_v0 = vld [vmem:[#allocation5 + $0x638] sm:$0xff]  ;;  %v2025_v3 = vpack.c.bf16 %v306_v59, %v300_v58 }
  0xab   :  { %2006 = vmatpush1.bf16.msra.mxu0 %v2005_v6  ;;  %v315_v1 = vld [vmem:[#allocation5 + $0x618] sm:$0xff]  ;;  %v321_v2 = vld [vmem:[#allocation5 + $0x648] sm:$0xff]  ;;  %v2217_v4 = vpack.c.bf16 %v308_v62, %v302_v60  ;;  %v2027_v5 = vpack.c.bf16 %v319_v0, %v313_v63  ;;  %v312_v6 = vld [vmem:[#allocation5 + $0x600] sm:$0xff] }
  0xac   :  { %2008 = vmatprep.subr.bf16.mxu0 %v2007_v9  ;;  %v318_v7 = vld [vmem:[#allocation5 + $0x630] sm:$0xff]  ;;  %v2219_v9 = vpack.c.bf16 %v321_v2, %v315_v1  ;;  %v320_v10 = vld [vmem:[#allocation5 + $0x640] sm:$0xff]  ;;  %v325_v11 = vld [vmem:[#allocation5 + $0x668] sm:$0xff] }
  0xad   :  { %2198 = vmatpush1.bf16.msra.mxu1 %v2197_v8  ;;  %v314_v8 = vld [vmem:[#allocation5 + $0x610] sm:$0xff]  ;;  %v331_v12 = vld [vmem:[#allocation5 + $0x698] sm:$0xff]  ;;  %v333_v14 = vld [vmem:[#allocation5 + $0x6a8] sm:$0xff]  ;;  %v2029_v16 = vpack.c.bf16 %v318_v7, %v312_v6 }
  0xae   :  { %2200 = vmatprep.subr.bf16.mxu1 %v2199_v13  ;;  %v327_v13 = vld [vmem:[#allocation5 + $0x678] sm:$0xff]  ;;  %v114_v15 = vld [vmem:[#allocation2] sm:$0xff]  ;;  %v2221_v17 = vpack.c.bf16 %v320_v10, %v314_v8  ;;  %v2031_v18 = vpack.c.bf16 %v331_v12, %v325_v11  ;;  %v332_v23 = vld [vmem:[#allocation5 + $0x6a0] sm:$0xff] }
  0xaf   :  { %2010 = vmatpush1.bf16.msra.mxu0 %v2009_v19  ;;  %v324_v19 = vld [vmem:[#allocation5 + $0x660] sm:$0xff]  ;;  %v2223_v22 = vpack.c.bf16 %v333_v14, %v327_v13  ;;  %v337_v24 = vld [vmem:[#allocation5 + $0x6c8] sm:$0xff]  ;;  %v339_v26 = vld [vmem:[#allocation5 + $0x6d8] sm:$0xff] }
  0xb0   :  { %2012 = vmatprep.subr.bf16.mxu0 %v2011_v21  ;;  %v326_v21 = vld [vmem:[#allocation5 + $0x670] sm:$0xff]  ;;  %v345_v27 = vld [vmem:[#allocation5 + $0x708] sm:$0xff]  ;;  %v344_v35 = vld [vmem:[#allocation5 + $0x700] sm:$0xff] }
  0xb1   :  { %2202 = vmatpush1.bf16.msra.mxu1 %v2201_v20  ;;  %v330_v20 = vld [vmem:[#allocation5 + $0x690] sm:$0xff]  ;;  %v2225_v29 = vpack.c.bf16 %v332_v23, %v326_v21  ;;  %v2227_v34 = vpack.c.bf16 %v345_v27, %v339_v26  ;;  %v349_v36 = vld [vmem:[#allocation5 + $0x728] sm:$0xff]  ;;  %v351_v38 = vld [vmem:[#allocation5 + $0x738] sm:$0xff] }
  0xb2   :  { %2204 = vmatprep.subr.bf16.mxu1 %v2203_v25  ;;  %v343_v25 = vld [vmem:[#allocation5 + $0x6f8] sm:$0xff]  ;;  %v2033_v28 = vpack.c.bf16 %v330_v20, %v324_v19  ;;  %v357_v39 = vld [vmem:[#allocation5 + $0x768] sm:$0xff]  ;;  %v356_v47 = vld [vmem:[#allocation5 + $0x760] sm:$0xff] }
  0xb3   :  { %2014 = vmatpush1.bf16.msra.mxu0 %v2013_v31  ;;  %v2035_v30 = vpack.c.bf16 %v343_v25, %v337_v24  ;;  %v336_v31 = vld [vmem:[#allocation5 + $0x6c0] sm:$0xff]  ;;  %v2231_v46 = vpack.c.bf16 %v357_v39, %v351_v38  ;;  %v361_v48 = vld [vmem:[#allocation5 + $0x788] sm:$0xff]  ;;  %v363_v50 = vld [vmem:[#allocation5 + $0x798] sm:$0xff] }
  0xb4   :  { %2016 = vmatprep.subr.bf16.mxu0 %v2015_v33  ;;  %v338_v33 = vld [vmem:[#allocation5 + $0x6d0] sm:$0xff]  ;;  %v369_v51 = vld [vmem:[#allocation5 + $0x7c8] sm:$0xff]  ;;  %v368_v59 = vld [vmem:[#allocation5 + $0x7c0] sm:$0xff] }
  0xb5   :  { %2206 = vmatpush1.bf16.msra.mxu1 %v2205_v32  ;;  %v342_v32 = vld [vmem:[#allocation5 + $0x6f0] sm:$0xff]  ;;  %v2229_v41 = vpack.c.bf16 %v344_v35, %v338_v33  ;;  %v2235_v58 = vpack.c.bf16 %v369_v51, %v363_v50  ;;  %v373_v60 = vld [vmem:[#allocation5 + $0x7e8] sm:$0xff]  ;;  %v375_v62 = vld [vmem:[#allocation5 + $0x7f8] sm:$0xff] }
  0xb6   :  { %2208 = vmatprep.subr.bf16.mxu1 %v2207_v37  ;;  %v355_v37 = vld [vmem:[#allocation5 + $0x758] sm:$0xff]  ;;  %v2037_v40 = vpack.c.bf16 %v342_v32, %v336_v31  ;;  %v381_v63 = vld [vmem:[#allocation5 + $0x828] sm:$0xff]  ;;  %v380_v7 = vld [vmem:[#allocation5 + $0x820] sm:$0xff] }
  0xb7   :  { %2018 = vmatpush1.bf16.msra.mxu0 %v2017_v43  ;;  %v2039_v42 = vpack.c.bf16 %v355_v37, %v349_v36  ;;  %v348_v43 = vld [vmem:[#allocation5 + $0x720] sm:$0xff]  ;;  %v2239_v6 = vpack.c.bf16 %v381_v63, %v375_v62  ;;  %v385_v8 = vld [vmem:[#allocation5 + $0x848] sm:$0xff]  ;;  %v387_v10 = vld [vmem:[#allocation5 + $0x858] sm:$0xff] }
  0xb8   :  { %2020 = vmatprep.subr.bf16.mxu0 %v2019_v45  ;;  %v350_v45 = vld [vmem:[#allocation5 + $0x730] sm:$0xff]  ;;  %v393_v11 = vld [vmem:[#allocation5 + $0x888] sm:$0xff]  ;;  %v384_v13 = vld [vmem:[#allocation5 + $0x840] sm:$0xff] }
  0xb9   :  { %2210 = vmatpush1.bf16.msra.mxu1 %v2209_v44  ;;  %v354_v44 = vld [vmem:[#allocation5 + $0x750] sm:$0xff]  ;;  %v2233_v53 = vpack.c.bf16 %v356_v47, %v350_v45  ;;  %v2243_v19 = vpack.c.bf16 %v393_v11, %v387_v10  ;;  %v397_v20 = vld [vmem:[#allocation5 + $0x8a8] sm:$0xff]  ;;  %v403_v21 = vld [vmem:[#allocation5 + $0x8d8] sm:$0xff] }
  0xba   :  { %2212 = vmatprep.subr.bf16.mxu1 %v2211_v49  ;;  %v367_v49 = vld [vmem:[#allocation5 + $0x7b8] sm:$0xff]  ;;  %v2041_v52 = vpack.c.bf16 %v354_v44, %v348_v43  ;;  %v405_v24 = vld [vmem:[#allocation5 + $0x8e8] sm:$0xff]  ;;  %v2055_v27 = vpack.c.bf16 %v403_v21, %v397_v20  ;;  %v404_v32 = vld [vmem:[#allocation5 + $0x8e0] sm:$0xff] }
  0xbb   :  { %2022 = vmatpush1.bf16.msra.mxu0 %v2021_v55  ;;  %v2043_v54 = vpack.c.bf16 %v367_v49, %v361_v48  ;;  %v360_v55 = vld [vmem:[#allocation5 + $0x780] sm:$0xff]  ;;  %v399_v23 = vld [vmem:[#allocation5 + $0x8b8] sm:$0xff]  ;;  %v409_v33 = vld [vmem:[#allocation5 + $0x908] sm:$0xff] }
  0xbc   :  { %2024 = vmatprep.subr.bf16.mxu0 %v2023_v57  ;;  %v362_v57 = vld [vmem:[#allocation5 + $0x790] sm:$0xff]  ;;  %v2247_v31 = vpack.c.bf16 %v405_v24, %v399_v23  ;;  %v411_v35 = vld [vmem:[#allocation5 + $0x918] sm:$0xff]  ;;  %v417_v36 = vld [vmem:[#allocation5 + $0x948] sm:$0xff] }
  0xbd   :  { %2214 = vmatpush1.bf16.msra.mxu1 %v2213_v56  ;;  %v366_v56 = vld [vmem:[#allocation5 + $0x7b0] sm:$0xff]  ;;  %v2237_v1 = vpack.c.bf16 %v368_v59, %v362_v57  ;;  %v2251_v43 = vpack.c.bf16 %v417_v36, %v411_v35  ;;  %v416_v44 = vld [vmem:[#allocation5 + $0x940] sm:$0xff]  ;;  %v421_v45 = vld [vmem:[#allocation5 + $0x968] sm:$0xff] }
  0xbe   :  { %2216 = vmatprep.subr.bf16.mxu1 %v2215_v61  ;;  %v379_v61 = vld [vmem:[#allocation5 + $0x818] sm:$0xff]  ;;  %v2045_v0 = vpack.c.bf16 %v366_v56, %v360_v55  ;;  %v429_v48 = vld [vmem:[#allocation5 + $0x9a8] sm:$0xff]  ;;  %v428_v56 = vld [vmem:[#allocation5 + $0x9a0] sm:$0xff] }
  0xbf   :  { %2026 = vmatpush1.bf16.msra.mxu0 %v2025_v3  ;;  %v2047_v2 = vpack.c.bf16 %v379_v61, %v373_v60  ;;  %v372_v3 = vld [vmem:[#allocation5 + $0x7e0] sm:$0xff]  ;;  %v423_v47 = vld [vmem:[#allocation5 + $0x978] sm:$0xff]  ;;  %v433_v57 = vld [vmem:[#allocation5 + $0x9c8] sm:$0xff] }
  0xc0   :  { %2028 = vmatprep.subr.bf16.mxu0 %v2027_v5  ;;  %v374_v5 = vld [vmem:[#allocation5 + $0x7f0] sm:$0xff]  ;;  %v2255_v55 = vpack.c.bf16 %v429_v48, %v423_v47  ;;  %v435_v59 = vld [vmem:[#allocation5 + $0x9d8] sm:$0xff]  ;;  %v441_v60 = vld [vmem:[#allocation5 + $0xa08] sm:$0xff] }
  0xc1   :  { %2218 = vmatpush1.bf16.msra.mxu1 %v2217_v4  ;;  %v378_v4 = vld [vmem:[#allocation5 + $0x810] sm:$0xff]  ;;  %v2241_v14 = vpack.c.bf16 %v380_v7, %v374_v5  ;;  %v445_v5 = vld [vmem:[#allocation5 + $0xa28] sm:$0xff]  ;;  %v447_v7 = vld [vmem:[#allocation5 + $0xa38] sm:$0xff] }
  0xc2   :  { %2220 = vmatprep.subr.bf16.mxu1 %v2219_v9  ;;  %793 = vmatmul.mubr.f32.vlgmr.msra.gmra.mrb[0].mxu0 %v114_v15  ;;  %v391_v9 = vld [vmem:[#allocation5 + $0x878] sm:$0xff]  ;;  %v2049_v12 = vpack.c.bf16 %v378_v4, %v372_v3  ;;  %v2259_v3 = vpack.c.bf16 %v441_v60, %v435_v59  ;;  %v440_v4 = vld [vmem:[#allocation5 + $0xa00] sm:$0xff]  ;;  %v465_v20 = vld [vmem:[#allocation5 + $0xac8] sm:$0xff] }
  0xc3   :  { %2030 = vmatpush1.bf16.msra.mxu0 %v2029_v16  ;;  %v390_v16 = vld [vmem:[#allocation5 + $0x870] sm:$0xff]  ;;  %v456_v24 = vld [vmem:[#allocation5 + $0xa80] sm:$0xff] }
  0xc4   :  { %1006 = vmatmul.mubr.f32.vlgmr.msra.gmra.mrb[0].mxu1 %v114_v15  ;;  %2032 = vmatprep.subr.bf16.mxu0 %v2031_v18  ;;  %v2051_v15 = vpack.c.bf16 %v391_v9, %v385_v8  ;;  %v392_v18 = vld [vmem:[#allocation5 + $0x880] sm:$0xff]  ;;  %v2053_v25 = vpack.c.bf16 %v390_v16, %v384_v13  ;;  %v453_v8 = vld [vmem:[#allocation5 + $0xa68] sm:$0xff]  ;;  %v450_v13 = vld [vmem:[#allocation5 + $0xa50] sm:$0xff] }
  0xc5   :  { %2222 = vmatpush1.bf16.msra.mxu1 %v2221_v17  ;;  %v386_v17 = vld [vmem:[#allocation5 + $0x850] sm:$0xff]  ;;  %v452_v16 = vld [vmem:[#allocation5 + $0xa60] sm:$0xff] }
  0xc6   :  { %2224 = vmatprep.subr.bf16.mxu1 %v2223_v22  ;;  %v117_v22 = vld [vmem:[#allocation2 + $0x18] sm:$0xff]  ;;  %v2245_v26 = vpack.c.bf16 %v392_v18, %v386_v17  ;;  %v463_v18 = vld [vmem:[#allocation5 + $0xab8] sm:$0xff]  ;;  %v468_v36 = vld [vmem:[#allocation5 + $0xae0] sm:$0xff] }
  0xc7   :  { %2034 = vmatpush1.bf16.msra.mxu0 %v2033_v28  ;;  %863 = vmatprep.mubr.f32.mxu0 %v117_v22  ;;  %v396_v28 = vld [vmem:[#allocation5 + $0x8a0] sm:$0xff]  ;;  %v457_v17 = vld [vmem:[#allocation5 + $0xa88] sm:$0xff] }
  0xc8   :  { %2036 = vmatprep.subr.bf16.mxu0 %v2035_v30  ;;  %1076 = vmatprep.mubr.f32.mxu1 %v117_v22  ;;  %v398_v30 = vld [vmem:[#allocation5 + $0x8b0] sm:$0xff]  ;;  %v2075_v23 = vpack.c.bf16 %v463_v18, %v457_v17  ;;  %v480_v48 = vld [vmem:[#allocation5 + $0xb40] sm:$0xff] }
  0xc9   :  { %2226 = vmatpush1.bf16.msra.mxu1 %v2225_v29  ;;  %v402_v29 = vld [vmem:[#allocation5 + $0x8d0] sm:$0xff]  ;;  %v2249_v38 = vpack.c.bf16 %v404_v32, %v398_v30  ;;  %v475_v30 = vld [vmem:[#allocation5 + $0xb18] sm:$0xff]  ;;  %v477_v32 = vld [vmem:[#allocation5 + $0xb28] sm:$0xff] }
  0xca   :  { %2228 = vmatprep.subr.bf16.mxu1 %v2227_v34  ;;  %v415_v34 = vld [vmem:[#allocation5 + $0x938] sm:$0xff]  ;;  %v2057_v37 = vpack.c.bf16 %v402_v29, %v396_v28  ;;  %v464_v28 = vld [vmem:[#allocation5 + $0xac0] sm:$0xff]  ;;  %v469_v29 = vld [vmem:[#allocation5 + $0xae8] sm:$0xff] }
  0xcb   :  { %2038 = vmatpush1.bf16.msra.mxu0 %v2037_v40  ;;  %v2059_v39 = vpack.c.bf16 %v415_v34, %v409_v33  ;;  %v408_v40 = vld [vmem:[#allocation5 + $0x900] sm:$0xff]  ;;  %v2079_v35 = vpack.c.bf16 %v475_v30, %v469_v29  ;;  %v537_v29 = vld [vmem:[#allocation5 + $0xd08] sm:$0xff]  ;;  %v119_v30 = vld [vmem:[#allocation2 + $0x28] sm:$0xff] }
  0xcc   :  { %2040 = vmatprep.subr.bf16.mxu0 %v2039_v42  ;;  %v410_v42 = vld [vmem:[#allocation5 + $0x910] sm:$0xff]  ;;  %v492_v60 = vld [vmem:[#allocation5 + $0xba0] sm:$0xff] }
  0xcd   :  { %2230 = vmatpush1.bf16.msra.mxu1 %v2229_v41  ;;  %v414_v41 = vld [vmem:[#allocation5 + $0x930] sm:$0xff]  ;;  %v2253_v50 = vpack.c.bf16 %v416_v44, %v410_v42  ;;  %v487_v42 = vld [vmem:[#allocation5 + $0xb78] sm:$0xff]  ;;  %v489_v44 = vld [vmem:[#allocation5 + $0xb88] sm:$0xff] }
  0xce   :  { %2232 = vmatprep.subr.bf16.mxu1 %v2231_v46  ;;  %v427_v46 = vld [vmem:[#allocation5 + $0x998] sm:$0xff]  ;;  %v2061_v49 = vpack.c.bf16 %v414_v41, %v408_v40  ;;  %v476_v40 = vld [vmem:[#allocation5 + $0xb20] sm:$0xff]  ;;  %v481_v41 = vld [vmem:[#allocation5 + $0xb48] sm:$0xff] }
  0xcf   :  { %2042 = vmatpush1.bf16.msra.mxu0 %v2041_v52  ;;  %v2063_v51 = vpack.c.bf16 %v427_v46, %v421_v45  ;;  %v420_v52 = vld [vmem:[#allocation5 + $0x960] sm:$0xff]  ;;  %v2083_v47 = vpack.c.bf16 %v487_v42, %v481_v41  ;;  %v543_v41 = vld [vmem:[#allocation5 + $0xd38] sm:$0xff]  ;;  %v549_v42 = vld [vmem:[#allocation5 + $0xd68] sm:$0xff] }
  0xd0   :  { %2044 = vmatprep.subr.bf16.mxu0 %v2043_v54  ;;  %v422_v54 = vld [vmem:[#allocation5 + $0x970] sm:$0xff]  ;;  %v116_v17 = vld [vmem:[#allocation2 + $0x10] sm:$0xff] }
  0xd1   :  { %2234 = vmatpush1.bf16.msra.mxu1 %v2233_v53  ;;  %v426_v53 = vld [vmem:[#allocation5 + $0x990] sm:$0xff]  ;;  %v2257_v62 = vpack.c.bf16 %v428_v56, %v422_v54  ;;  %v499_v54 = vld [vmem:[#allocation5 + $0xbd8] sm:$0xff]  ;;  %v501_v56 = vld [vmem:[#allocation5 + $0xbe8] sm:$0xff] }
  0xd2   :  { %2236 = vmatprep.subr.bf16.mxu1 %v2235_v58  ;;  %v439_v58 = vld [vmem:[#allocation5 + $0x9f8] sm:$0xff]  ;;  %v2065_v61 = vpack.c.bf16 %v426_v53, %v420_v52  ;;  %v488_v52 = vld [vmem:[#allocation5 + $0xb80] sm:$0xff]  ;;  %v493_v53 = vld [vmem:[#allocation5 + $0xba8] sm:$0xff] }
  0xd3   :  { %2046 = vmatpush1.bf16.msra.mxu0 %v2045_v0  ;;  %v2067_v63 = vpack.c.bf16 %v439_v58, %v433_v57  ;;  %v432_v0 = vld [vmem:[#allocation5 + $0x9c0] sm:$0xff]  ;;  %v2087_v59 = vpack.c.bf16 %v499_v54, %v493_v53  ;;  %v555_v53 = vld [vmem:[#allocation5 + $0xd98] sm:$0xff]  ;;  %v561_v54 = vld [vmem:[#allocation5 + $0xdc8] sm:$0xff] }
  0xd4   :  { %2048 = vmatprep.subr.bf16.mxu0 %v2047_v2  ;;  %v434_v2 = vld [vmem:[#allocation5 + $0x9d0] sm:$0xff] }
  0xd5   :  { %2238 = vmatpush1.bf16.msra.mxu1 %v2237_v1  ;;  %v438_v1 = vld [vmem:[#allocation5 + $0x9f0] sm:$0xff]  ;;  %v2261_v10 = vpack.c.bf16 %v440_v4, %v434_v2  ;;  %v511_v2 = vld [vmem:[#allocation5 + $0xc38] sm:$0xff]  ;;  %v513_v4 = vld [vmem:[#allocation5 + $0xc48] sm:$0xff] }
  0xd6   :  { %2240 = vmatprep.subr.bf16.mxu1 %v2239_v6  ;;  %v451_v6 = vld [vmem:[#allocation5 + $0xa58] sm:$0xff]  ;;  %v2069_v9 = vpack.c.bf16 %v438_v1, %v432_v0  ;;  %v500_v0 = vld [vmem:[#allocation5 + $0xbe0] sm:$0xff]  ;;  %v505_v1 = vld [vmem:[#allocation5 + $0xc08] sm:$0xff] }
  0xd7   :  { %2050 = vmatpush1.bf16.msra.mxu0 %v2049_v12  ;;  %v2071_v11 = vpack.c.bf16 %v451_v6, %v445_v5  ;;  %v444_v12 = vld [vmem:[#allocation5 + $0xa20] sm:$0xff] }
  0xd8   :  { %2052 = vmatprep.subr.bf16.mxu0 %v2051_v15  ;;  %v2263_v15 = vpack.c.bf16 %v453_v8, %v447_v7  ;;  %v2073_v21 = vpack.c.bf16 %v450_v13, %v444_v12  ;;  %v2091_v7 = vpack.c.bf16 %v511_v2, %v505_v1  ;;  %v504_v8 = vld [vmem:[#allocation5 + $0xc00] sm:$0xff]  ;;  %v517_v13 = vld [vmem:[#allocation5 + $0xc68] sm:$0xff]  ;;  %v567_v1 = vld [vmem:[#allocation5 + $0xdf8] sm:$0xff] }
  0xd9   :  { %2242 = vmatpush1.bf16.msra.mxu1 %v2241_v14  ;;  %v446_v14 = vld [vmem:[#allocation5 + $0xa30] sm:$0xff]  ;;  %v512_v12 = vld [vmem:[#allocation5 + $0xc40] sm:$0xff]  ;;  %v573_v2 = vld [vmem:[#allocation5 + $0xe28] sm:$0xff] }
  0xda   :  { %2244 = vmatprep.subr.bf16.mxu1 %v2243_v19  ;;  %v459_v19 = vld [vmem:[#allocation5 + $0xa98] sm:$0xff]  ;;  %v2265_v22 = vpack.c.bf16 %v452_v16, %v446_v14  ;;  %v525_v16 = vld [vmem:[#allocation5 + $0xca8] sm:$0xff] }
  0xdb   :  { %2054 = vmatpush1.bf16.msra.mxu0 %v2053_v25  ;;  %v462_v25 = vld [vmem:[#allocation5 + $0xab0] sm:$0xff]  ;;  %v523_v14 = vld [vmem:[#allocation5 + $0xc98] sm:$0xff] }
  0xdc   :  { %2056 = vmatprep.subr.bf16.mxu0 %v2055_v27  ;;  %v2267_v27 = vpack.c.bf16 %v465_v20, %v459_v19  ;;  %v2077_v33 = vpack.c.bf16 %v462_v25, %v456_v24  ;;  %v2095_v20 = vpack.c.bf16 %v523_v14, %v517_v13  ;;  %v524_v25 = vld [vmem:[#allocation5 + $0xca0] sm:$0xff]  ;;  %v579_v13 = vld [vmem:[#allocation5 + $0xe58] sm:$0xff]  ;;  %v585_v14 = vld [vmem:[#allocation5 + $0xe88] sm:$0xff] }
  0xdd   :  { %2246 = vmatpush1.bf16.msra.mxu1 %v2245_v26  ;;  %v458_v26 = vld [vmem:[#allocation5 + $0xa90] sm:$0xff] }
  0xde   :  { %2248 = vmatprep.subr.bf16.mxu1 %v2247_v31  ;;  %v471_v31 = vld [vmem:[#allocation5 + $0xaf8] sm:$0xff]  ;;  %v2269_v34 = vpack.c.bf16 %v464_v28, %v458_v26  ;;  %v529_v26 = vld [vmem:[#allocation5 + $0xcc8] sm:$0xff] }
  0xdf   :  { %2058 = vmatpush1.bf16.msra.mxu0 %v2057_v37  ;;  %v474_v37 = vld [vmem:[#allocation5 + $0xb10] sm:$0xff]  ;;  %v531_v28 = vld [vmem:[#allocation5 + $0xcd8] sm:$0xff] }
  0xe0   :  { %2060 = vmatprep.subr.bf16.mxu0 %v2059_v39  ;;  %v2271_v39 = vpack.c.bf16 %v477_v32, %v471_v31  ;;  %v2081_v45 = vpack.c.bf16 %v474_v37, %v468_v36  ;;  %v530_v36 = vld [vmem:[#allocation5 + $0xcd0] sm:$0xff]  ;;  %v2291_v37 = vpack.c.bf16 %v537_v29, %v531_v28 }
  0xe1   :  { %2250 = vmatpush1.bf16.msra.mxu1 %v2249_v38  ;;  %v470_v38 = vld [vmem:[#allocation5 + $0xaf0] sm:$0xff] }
  0xe2   :  { %2252 = vmatprep.subr.bf16.mxu1 %v2251_v43  ;;  %v483_v43 = vld [vmem:[#allocation5 + $0xb58] sm:$0xff]  ;;  %v2273_v46 = vpack.c.bf16 %v476_v40, %v470_v38  ;;  %v536_v38 = vld [vmem:[#allocation5 + $0xd00] sm:$0xff] }
  0xe3   :  { %2062 = vmatpush1.bf16.msra.mxu0 %v2061_v49  ;;  %v486_v49 = vld [vmem:[#allocation5 + $0xb70] sm:$0xff]  ;;  %v547_v40 = vld [vmem:[#allocation5 + $0xd58] sm:$0xff] }
  0xe4   :  { %2064 = vmatprep.subr.bf16.mxu0 %v2063_v51  ;;  %v2275_v51 = vpack.c.bf16 %v489_v44, %v483_v43  ;;  %v2085_v57 = vpack.c.bf16 %v486_v49, %v480_v48  ;;  %v2293_v44 = vpack.c.bf16 %v536_v38, %v530_v36  ;;  %v542_v48 = vld [vmem:[#allocation5 + $0xd30] sm:$0xff]  ;;  %v2295_v49 = vpack.c.bf16 %v549_v42, %v543_v41  ;;  %v607_v36 = vld [vmem:[#allocation5 + $0xf38] sm:$0xff]  ;;  %v609_v38 = vld [vmem:[#allocation5 + $0xf48] sm:$0xff] }
  0xe5   :  { %2254 = vmatpush1.bf16.msra.mxu1 %v2253_v50  ;;  %v482_v50 = vld [vmem:[#allocation5 + $0xb50] sm:$0xff]  ;;  %v600_v42 = vld [vmem:[#allocation5 + $0xf00] sm:$0xff] }
  0xe6   :  { %2256 = vmatprep.subr.bf16.mxu1 %v2255_v55  ;;  %v495_v55 = vld [vmem:[#allocation5 + $0xbb8] sm:$0xff]  ;;  %v2277_v58 = vpack.c.bf16 %v488_v52, %v482_v50  ;;  %v548_v50 = vld [vmem:[#allocation5 + $0xd60] sm:$0xff] }
  0xe7   :  { %2066 = vmatpush1.bf16.msra.mxu0 %v2065_v61  ;;  %v498_v61 = vld [vmem:[#allocation5 + $0xbd0] sm:$0xff]  ;;  %v559_v52 = vld [vmem:[#allocation5 + $0xdb8] sm:$0xff] }
  0xe8   :  { %2068 = vmatprep.subr.bf16.mxu0 %v2067_v63  ;;  %v2279_v63 = vpack.c.bf16 %v501_v56, %v495_v55  ;;  %v2089_v5 = vpack.c.bf16 %v498_v61, %v492_v60  ;;  %v2297_v56 = vpack.c.bf16 %v548_v50, %v542_v48  ;;  %v554_v60 = vld [vmem:[#allocation5 + $0xd90] sm:$0xff]  ;;  %v2299_v61 = vpack.c.bf16 %v561_v54, %v555_v53  ;;  %v619_v48 = vld [vmem:[#allocation5 + $0xf98] sm:$0xff]  ;;  %v621_v50 = vld [vmem:[#allocation5 + $0xfa8] sm:$0xff] }
  0xe9   :  { %2258 = vmatpush1.bf16.msra.mxu1 %v2257_v62  ;;  %v494_v62 = vld [vmem:[#allocation5 + $0xbb0] sm:$0xff]  ;;  %v612_v54 = vld [vmem:[#allocation5 + $0xf60] sm:$0xff] }
  0xea   :  { %2260 = vmatprep.subr.bf16.mxu1 %v2259_v3  ;;  %v507_v3 = vld [vmem:[#allocation5 + $0xc18] sm:$0xff]  ;;  %v2281_v6 = vpack.c.bf16 %v500_v0, %v494_v62  ;;  %v560_v62 = vld [vmem:[#allocation5 + $0xdc0] sm:$0xff] }
  0xeb   :  { %2070 = vmatpush1.bf16.msra.mxu0 %v2069_v9  ;;  %v510_v9 = vld [vmem:[#allocation5 + $0xc30] sm:$0xff]  ;;  %v571_v0 = vld [vmem:[#allocation5 + $0xe18] sm:$0xff] }
  0xec   :  { %2072 = vmatprep.subr.bf16.mxu0 %v2071_v11  ;;  %v2283_v11 = vpack.c.bf16 %v513_v4, %v507_v3  ;;  %v2093_v18 = vpack.c.bf16 %v510_v9, %v504_v8  ;;  %v2301_v4 = vpack.c.bf16 %v560_v62, %v554_v60  ;;  %v566_v8 = vld [vmem:[#allocation5 + $0xdf0] sm:$0xff]  ;;  %v2303_v9 = vpack.c.bf16 %v573_v2, %v567_v1  ;;  %v631_v60 = vld [vmem:[#allocation5 + $0xff8] sm:$0xff]  ;;  %v633_v62 = vld [vmem:[#allocation5 + $0x1008] sm:$0xff] }
  0xed   :  { %2262 = vmatpush1.bf16.msra.mxu1 %v2261_v10  ;;  %v506_v10 = vld [vmem:[#allocation5 + $0xc10] sm:$0xff]  ;;  %v624_v2 = vld [vmem:[#allocation5 + $0xfc0] sm:$0xff] }
  0xee   :  { %2264 = vmatprep.subr.bf16.mxu1 %v2263_v15  ;;  %v519_v15 = vld [vmem:[#allocation5 + $0xc78] sm:$0xff]  ;;  %v2285_v19 = vpack.c.bf16 %v512_v12, %v506_v10  ;;  %v572_v10 = vld [vmem:[#allocation5 + $0xe20] sm:$0xff] }
  0xef   :  { %2074 = vmatpush1.bf16.msra.mxu0 %v2073_v21  ;;  %v516_v21 = vld [vmem:[#allocation5 + $0xc60] sm:$0xff]  ;;  %v2287_v24 = vpack.c.bf16 %v525_v16, %v519_v15  ;;  %v583_v12 = vld [vmem:[#allocation5 + $0xe78] sm:$0xff]  ;;  %v2305_v16 = vpack.c.bf16 %v572_v10, %v566_v8  ;;  %v645_v10 = vld [vmem:[#allocation5 + $0x1068] sm:$0xff] }
  0xf0   :  { %2076 = vmatprep.subr.bf16.mxu0 %v2075_v23  ;;  %v518_v23 = vld [vmem:[#allocation5 + $0xc70] sm:$0xff]  ;;  %v643_v8 = vld [vmem:[#allocation5 + $0x1058] sm:$0xff] }
  0xf1   :  { %2266 = vmatpush1.bf16.msra.mxu1 %v2265_v22  ;;  %v522_v22 = vld [vmem:[#allocation5 + $0xc90] sm:$0xff]  ;;  %v2289_v32 = vpack.c.bf16 %v524_v25, %v518_v23  ;;  %v589_v23 = vld [vmem:[#allocation5 + $0xea8] sm:$0xff]  ;;  %v591_v25 = vld [vmem:[#allocation5 + $0xeb8] sm:$0xff] }
  0xf2   :  { %2268 = vmatprep.subr.bf16.mxu1 %v2267_v27  ;;  %v535_v27 = vld [vmem:[#allocation5 + $0xcf8] sm:$0xff]  ;;  %v2097_v31 = vpack.c.bf16 %v522_v22, %v516_v21  ;;  %v2307_v21 = vpack.c.bf16 %v585_v14, %v579_v13  ;;  %v584_v22 = vld [vmem:[#allocation5 + $0xe80] sm:$0xff] }
  0xf3   :  { %2078 = vmatpush1.bf16.msra.mxu0 %v2077_v33  ;;  %v2099_v33 = vpack.c.bf16 %v535_v27, %v529_v26  ;;  %v597_v26 = vld [vmem:[#allocation5 + $0xee8] sm:$0xff]  ;;  %v636_v14 = vld [vmem:[#allocation5 + $0x1020] sm:$0xff] }
  0xf4   :  { %2080 = vmatprep.subr.bf16.mxu0 %v2079_v35  ;;  %v534_v35 = vld [vmem:[#allocation5 + $0xcf0] sm:$0xff] }
  0xf5   :  { %2270 = vmatpush1.bf16.msra.mxu1 %v2269_v34  ;;  %v528_v34 = vld [vmem:[#allocation5 + $0xcc0] sm:$0xff] }
  0xf6   :  { %2272 = vmatprep.subr.bf16.mxu1 %v2271_v39  ;;  %v541_v39 = vld [vmem:[#allocation5 + $0xd28] sm:$0xff]  ;;  %v2101_v43 = vpack.c.bf16 %v534_v35, %v528_v34  ;;  %v596_v34 = vld [vmem:[#allocation5 + $0xee0] sm:$0xff] }
  0xf7   :  { %2082 = vmatpush1.bf16.msra.mxu0 %v2081_v45  ;;  %v2103_v45 = vpack.c.bf16 %v547_v40, %v541_v39  ;;  %v601_v35 = vld [vmem:[#allocation5 + $0xf08] sm:$0xff] }
  0xf8   :  { %2084 = vmatprep.subr.bf16.mxu0 %v2083_v47  ;;  %v546_v47 = vld [vmem:[#allocation5 + $0xd50] sm:$0xff]  ;;  %v2123_v41 = vpack.c.bf16 %v607_v36, %v601_v35 }
  0xf9   :  { %2274 = vmatpush1.bf16.msra.mxu1 %v2273_v46  ;;  %v540_v46 = vld [vmem:[#allocation5 + $0xd20] sm:$0xff] }
  0xfa   :  { %2276 = vmatprep.subr.bf16.mxu1 %v2275_v51  ;;  %v553_v51 = vld [vmem:[#allocation5 + $0xd88] sm:$0xff]  ;;  %v2105_v55 = vpack.c.bf16 %v546_v47, %v540_v46  ;;  %v608_v46 = vld [vmem:[#allocation5 + $0xf40] sm:$0xff] }
  0xfb   :  { %2086 = vmatpush1.bf16.msra.mxu0 %v2085_v57  ;;  %v2107_v57 = vpack.c.bf16 %v559_v52, %v553_v51  ;;  %v613_v47 = vld [vmem:[#allocation5 + $0xf68] sm:$0xff] }
  0xfc   :  { %2088 = vmatprep.subr.bf16.mxu0 %v2087_v59  ;;  %v558_v59 = vld [vmem:[#allocation5 + $0xdb0] sm:$0xff]  ;;  %v2127_v53 = vpack.c.bf16 %v619_v48, %v613_v47 }
  0xfd   :  { %2278 = vmatpush1.bf16.msra.mxu1 %v2277_v58  ;;  %v552_v58 = vld [vmem:[#allocation5 + $0xd80] sm:$0xff] }
  0xfe   :  { %2280 = vmatprep.subr.bf16.mxu1 %v2279_v63  ;;  %v565_v63 = vld [vmem:[#allocation5 + $0xde8] sm:$0xff]  ;;  %v2109_v3 = vpack.c.bf16 %v558_v59, %v552_v58  ;;  %v620_v58 = vld [vmem:[#allocation5 + $0xfa0] sm:$0xff] }
  0xff   :  { %2090 = vmatpush1.bf16.msra.mxu0 %v2089_v5  ;;  %v2111_v5 = vpack.c.bf16 %v571_v0, %v565_v63  ;;  %v625_v59 = vld [vmem:[#allocation5 + $0xfc8] sm:$0xff] }
 0x100   :  { %2092 = vmatprep.subr.bf16.mxu0 %v2091_v7  ;;  %v570_v7 = vld [vmem:[#allocation5 + $0xe10] sm:$0xff]  ;;  %v2131_v1 = vpack.c.bf16 %v631_v60, %v625_v59 }
 0x101   :  { %2282 = vmatpush1.bf16.msra.mxu1 %v2281_v6  ;;  %v564_v6 = vld [vmem:[#allocation5 + $0xde0] sm:$0xff] }
 0x102   :  { %2284 = vmatprep.subr.bf16.mxu1 %v2283_v11  ;;  %864 = vmatmul.mubr.f32.vlgmr.msra.gmra.mrb[0].mxu0 %v116_v17  ;;  %v577_v11 = vld [vmem:[#allocation5 + $0xe48] sm:$0xff]  ;;  %v2113_v15 = vpack.c.bf16 %v570_v7, %v564_v6  ;;  %v632_v6 = vld [vmem:[#allocation5 + $0x1000] sm:$0xff] }
 0x103   :  { %2094 = vmatpush1.bf16.msra.mxu0 %v2093_v18  ;;  %934 = vmatprep.mubr.f32.mxu0 %v119_v30  ;;  %v576_v18 = vld [vmem:[#allocation5 + $0xe40] sm:$0xff]  ;;  %v637_v7 = vld [vmem:[#allocation5 + $0x1028] sm:$0xff] }
 0x104   :  { %1077 = vmatmul.mubr.f32.vlgmr.msra.gmra.mrb[0].mxu1 %v116_v17  ;;  %2096 = vmatprep.subr.bf16.mxu0 %v2095_v20  ;;  %v2115_v17 = vpack.c.bf16 %v583_v12, %v577_v11  ;;  %v578_v20 = vld [vmem:[#allocation5 + $0xe50] sm:$0xff]  ;;  %v2135_v13 = vpack.c.bf16 %v643_v8, %v637_v7  ;;  %v124_v8 = vld [vmem:[#allocation5 + $0x20] sm:$0xff] }
 0x105   :  { %2286 = vmatpush1.bf16.msra.mxu1 %v2285_v19  ;;  %1147 = vmatprep.mubr.f32.mxu1 %v119_v30  ;;  %v582_v19 = vld [vmem:[#allocation5 + $0xe70] sm:$0xff]  ;;  %v2309_v28 = vpack.c.bf16 %v584_v22, %v578_v20  ;;  %v588_v30 = vld [vmem:[#allocation5 + $0xea0] sm:$0xff]  ;;  %v655_v20 = vld [vmem:[#allocation5 + $0x10b8] sm:$0xff] }
 0x106   :  { %2288 = vmatprep.subr.bf16.mxu1 %v2287_v24  ;;  %v595_v24 = vld [vmem:[#allocation5 + $0xed8] sm:$0xff]  ;;  %v2117_v27 = vpack.c.bf16 %v582_v19, %v576_v18  ;;  %v644_v18 = vld [vmem:[#allocation5 + $0x1060] sm:$0xff]  ;;  %v649_v19 = vld [vmem:[#allocation5 + $0x1088] sm:$0xff] }
 0x107   :  { %2098 = vmatpush1.bf16.msra.mxu0 %v2097_v31  ;;  %v2119_v29 = vpack.c.bf16 %v595_v24, %v589_v23  ;;  %v594_v31 = vld [vmem:[#allocation5 + $0xed0] sm:$0xff]  ;;  %v657_v22 = vld [vmem:[#allocation5 + $0x10c8] sm:$0xff] }
 0x108   :  { %2100 = vmatprep.subr.bf16.mxu0 %v2099_v33  ;;  %v2311_v33 = vpack.c.bf16 %v597_v26, %v591_v25  ;;  %v2121_v39 = vpack.c.bf16 %v594_v31, %v588_v30  ;;  %v2139_v25 = vpack.c.bf16 %v655_v20, %v649_v19  ;;  %v648_v26 = vld [vmem:[#allocation5 + $0x1080] sm:$0xff]  ;;  %v661_v31 = vld [vmem:[#allocation5 + $0x10e8] sm:$0xff] }
 0x109   :  { %2290 = vmatpush1.bf16.msra.mxu1 %v2289_v32  ;;  %v590_v32 = vld [vmem:[#allocation5 + $0xeb0] sm:$0xff]  ;;  %v656_v30 = vld [vmem:[#allocation5 + $0x10c0] sm:$0xff] }
 0x10a   :  { %2292 = vmatprep.subr.bf16.mxu1 %v2291_v37  ;;  %v603_v37 = vld [vmem:[#allocation5 + $0xf18] sm:$0xff]  ;;  %v2313_v40 = vpack.c.bf16 %v596_v34, %v590_v32  ;;  %v669_v34 = vld [vmem:[#allocation5 + $0x1128] sm:$0xff] }
 0x10b   :  { %2102 = vmatpush1.bf16.msra.mxu0 %v2101_v43  ;;  %v606_v43 = vld [vmem:[#allocation5 + $0xf30] sm:$0xff]  ;;  %v667_v32 = vld [vmem:[#allocation5 + $0x1118] sm:$0xff] }
 0x10c   :  { %2104 = vmatprep.subr.bf16.mxu0 %v2103_v45  ;;  %v2315_v45 = vpack.c.bf16 %v609_v38, %v603_v37  ;;  %v2125_v51 = vpack.c.bf16 %v606_v43, %v600_v42  ;;  %v2143_v37 = vpack.c.bf16 %v667_v32, %v661_v31  ;;  %v660_v38 = vld [vmem:[#allocation5 + $0x10e0] sm:$0xff]  ;;  %v673_v43 = vld [vmem:[#allocation5 + $0x1148] sm:$0xff]  ;;  %v179_v31 = vld [vmem:[#allocation5 + $0x1d8] sm:$0xff] }
 0x10d   :  { %2294 = vmatpush1.bf16.msra.mxu1 %v2293_v44  ;;  %v602_v44 = vld [vmem:[#allocation5 + $0xf10] sm:$0xff]  ;;  %v668_v42 = vld [vmem:[#allocation5 + $0x1120] sm:$0xff] }
 0x10e   :  { %2296 = vmatprep.subr.bf16.mxu1 %v2295_v49  ;;  %v615_v49 = vld [vmem:[#allocation5 + $0xf78] sm:$0xff]  ;;  %v2317_v52 = vpack.c.bf16 %v608_v46, %v602_v44  ;;  %v681_v46 = vld [vmem:[#allocation5 + $0x1188] sm:$0xff] }
 0x10f   :  { %2106 = vmatpush1.bf16.msra.mxu0 %v2105_v55  ;;  %v618_v55 = vld [vmem:[#allocation5 + $0xf90] sm:$0xff]  ;;  %v679_v44 = vld [vmem:[#allocation5 + $0x1178] sm:$0xff] }
 0x110   :  { %2108 = vmatprep.subr.bf16.mxu0 %v2107_v57  ;;  %v2319_v57 = vpack.c.bf16 %v621_v50, %v615_v49  ;;  %v2129_v63 = vpack.c.bf16 %v618_v55, %v612_v54  ;;  %v2147_v49 = vpack.c.bf16 %v679_v44, %v673_v43  ;;  %v672_v50 = vld [vmem:[#allocation5 + $0x1140] sm:$0xff]  ;;  %v685_v55 = vld [vmem:[#allocation5 + $0x11a8] sm:$0xff]  ;;  %v203_v43 = vld [vmem:[#allocation5 + $0x298] sm:$0xff] }
 0x111   :  { %2298 = vmatpush1.bf16.msra.mxu1 %v2297_v56  ;;  %v614_v56 = vld [vmem:[#allocation5 + $0xf70] sm:$0xff]  ;;  %v680_v54 = vld [vmem:[#allocation5 + $0x1180] sm:$0xff] }
 0x112   :  { %2300 = vmatprep.subr.bf16.mxu1 %v2299_v61  ;;  %v627_v61 = vld [vmem:[#allocation5 + $0xfd8] sm:$0xff]  ;;  %v2321_v0 = vpack.c.bf16 %v620_v58, %v614_v56  ;;  %v693_v58 = vld [vmem:[#allocation5 + $0x11e8] sm:$0xff] }
 0x113   :  { %2110 = vmatpush1.bf16.msra.mxu0 %v2109_v3  ;;  %v630_v3 = vld [vmem:[#allocation5 + $0xff0] sm:$0xff]  ;;  %v691_v56 = vld [vmem:[#allocation5 + $0x11d8] sm:$0xff] }
 0x114   :  { %2112 = vmatprep.subr.bf16.mxu0 %v2111_v5  ;;  %v2323_v5 = vpack.c.bf16 %v633_v62, %v627_v61  ;;  %v2133_v11 = vpack.c.bf16 %v630_v3, %v624_v2  ;;  %v2151_v61 = vpack.c.bf16 %v691_v56, %v685_v55  ;;  %v684_v62 = vld [vmem:[#allocation5 + $0x11a0] sm:$0xff]  ;;  %v125_v3 = vld [vmem:[#allocation5 + $0x28] sm:$0xff]  ;;  %v227_v55 = vld [vmem:[#allocation5 + $0x358] sm:$0xff] }
 0x115   :  { %2302 = vmatpush1.bf16.msra.mxu1 %v2301_v4  ;;  %v626_v4 = vld [vmem:[#allocation5 + $0xfd0] sm:$0xff]  ;;  %v692_v2 = vld [vmem:[#allocation5 + $0x11e0] sm:$0xff] }
 0x116   :  { %2304 = vmatprep.subr.bf16.mxu1 %v2303_v9  ;;  %v639_v9 = vld [vmem:[#allocation5 + $0x1038] sm:$0xff]  ;;  %v2325_v12 = vpack.c.bf16 %v632_v6, %v626_v4  ;;  %v1374_v56 = vld [vmem:[#allocation8 + $0x8] sm:$0xff] }
 0x117   :  { %2114 = vmatpush1.bf16.msra.mxu0 %v2113_v15  ;;  %v642_v15 = vld [vmem:[#allocation5 + $0x1050] sm:$0xff]  ;;  %v131_v4 = vld [vmem:[#allocation5 + $0x58] sm:$0xff] }
 0x118   :  { %2116 = vmatprep.subr.bf16.mxu0 %v2115_v17  ;;  %v2327_v17 = vpack.c.bf16 %v645_v10, %v639_v9  ;;  %v2137_v23 = vpack.c.bf16 %v642_v15, %v636_v14  ;;  %v2347_v7 = vpack.c.bf16 %v131_v4, %v125_v3  ;;  %v130_v9 = vld [vmem:[#allocation5 + $0x50] sm:$0xff]  ;;  %v137_v10 = vld [vmem:[#allocation5 + $0x88] sm:$0xff]  ;;  %v136_v15 = vld [vmem:[#allocation5 + $0x80] sm:$0xff] }
 0x119   :  { %2306 = vmatpush1.bf16.msra.mxu1 %v2305_v16  ;;  %v638_v16 = vld [vmem:[#allocation5 + $0x1030] sm:$0xff]  ;;  %v239_v3 = vld [vmem:[#allocation5 + $0x3b8] sm:$0xff] }
 0x11a   :  { %2308 = vmatprep.subr.bf16.mxu1 %v2307_v21  ;;  %v651_v21 = vld [vmem:[#allocation5 + $0x1098] sm:$0xff]  ;;  %v2329_v24 = vpack.c.bf16 %v644_v18, %v638_v16  ;;  %v142_v16 = vld [vmem:[#allocation5 + $0xb0] sm:$0xff] }
 0x11b   :  { %2118 = vmatpush1.bf16.msra.mxu0 %v2117_v27  ;;  %v654_v27 = vld [vmem:[#allocation5 + $0x10b0] sm:$0xff]  ;;  %v155_v18 = vld [vmem:[#allocation5 + $0x118] sm:$0xff]  ;;  %v2353_v19 = vpack.c.bf16 %v142_v16, %v136_v15 }
 0x11c   :  { %2120 = vmatprep.subr.bf16.mxu0 %v2119_v29  ;;  %v2331_v29 = vpack.c.bf16 %v657_v22, %v651_v21  ;;  %v2141_v35 = vpack.c.bf16 %v654_v27, %v648_v26  ;;  %v148_v21 = vld [vmem:[#allocation5 + $0xe0] sm:$0xff]  ;;  %v154_v22 = vld [vmem:[#allocation5 + $0x110] sm:$0xff]  ;;  %v251_v15 = vld [vmem:[#allocation5 + $0x418] sm:$0xff] }
 0x11d   :  { %2310 = vmatpush1.bf16.msra.mxu1 %v2309_v28  ;;  %v650_v28 = vld [vmem:[#allocation5 + $0x1090] sm:$0xff]  ;;  %v2357_v26 = vpack.c.bf16 %v154_v22, %v148_v21 }
 0x11e   :  { %2312 = vmatprep.subr.bf16.mxu1 %v2311_v33  ;;  %v663_v33 = vld [vmem:[#allocation5 + $0x10f8] sm:$0xff]  ;;  %v2333_v36 = vpack.c.bf16 %v656_v30, %v650_v28  ;;  %v160_v28 = vld [vmem:[#allocation5 + $0x140] sm:$0xff]  ;;  %v173_v30 = vld [vmem:[#allocation5 + $0x1a8] sm:$0xff] }
 0x11f   :  { %2122 = vmatpush1.bf16.msra.mxu0 %v2121_v39  ;;  %v666_v39 = vld [vmem:[#allocation5 + $0x1110] sm:$0xff] }
 0x120   :  { %2124 = vmatprep.subr.bf16.mxu0 %v2123_v41  ;;  %v2335_v41 = vpack.c.bf16 %v669_v34, %v663_v33  ;;  %v2145_v47 = vpack.c.bf16 %v666_v39, %v660_v38  ;;  %v2363_v33 = vpack.c.bf16 %v179_v31, %v173_v30  ;;  %v172_v34 = vld [vmem:[#allocation5 + $0x1a0] sm:$0xff]  ;;  %v1378_v4 = vld [vmem:[#allocation8 + $0x28] sm:$0xff]  ;;  %v1387_v31 = vld [vmem:[#allocation8 + $0x70] sm:$0xff] }
 0x121   :  { %2314 = vmatpush1.bf16.msra.mxu1 %v2313_v40  ;;  %v662_v40 = vld [vmem:[#allocation5 + $0x10f0] sm:$0xff]  ;;  %v1385_v30 = vld [vmem:[#allocation8 + $0x60] sm:$0xff] }
 0x122   :  { %2316 = vmatprep.subr.bf16.mxu1 %v2315_v45  ;;  %v675_v45 = vld [vmem:[#allocation5 + $0x1158] sm:$0xff]  ;;  %v2337_v48 = vpack.c.bf16 %v668_v42, %v662_v40  ;;  %v184_v40 = vld [vmem:[#allocation5 + $0x200] sm:$0xff]  ;;  %v197_v42 = vld [vmem:[#allocation5 + $0x268] sm:$0xff] }
 0x123   :  { %2126 = vmatpush1.bf16.msra.mxu0 %v2125_v51  ;;  %v678_v51 = vld [vmem:[#allocation5 + $0x1170] sm:$0xff] }
 0x124   :  { %2128 = vmatprep.subr.bf16.mxu0 %v2127_v53  ;;  %v2339_v53 = vpack.c.bf16 %v681_v46, %v675_v45  ;;  %v2149_v59 = vpack.c.bf16 %v678_v51, %v672_v50  ;;  %v2371_v45 = vpack.c.bf16 %v203_v43, %v197_v42  ;;  %v196_v46 = vld [vmem:[#allocation5 + $0x260] sm:$0xff]  ;;  %v1382_v16 = vld [vmem:[#allocation8 + $0x48] sm:$0xff]  ;;  %v1391_v43 = vld [vmem:[#allocation8 + $0x90] sm:$0xff] }
 0x125   :  { %2318 = vmatpush1.bf16.msra.mxu1 %v2317_v52  ;;  %v674_v52 = vld [vmem:[#allocation5 + $0x1150] sm:$0xff]  ;;  %v208_v51 = vld [vmem:[#allocation5 + $0x2c0] sm:$0xff] }
 0x126   :  { %2320 = vmatprep.subr.bf16.mxu1 %v2319_v57  ;;  %v687_v57 = vld [vmem:[#allocation5 + $0x11b8] sm:$0xff]  ;;  %v2341_v60 = vpack.c.bf16 %v680_v54, %v674_v52  ;;  %v214_v52 = vld [vmem:[#allocation5 + $0x2f0] sm:$0xff]  ;;  %v221_v54 = vld [vmem:[#allocation5 + $0x328] sm:$0xff] }
 0x127   :  { %2130 = vmatpush1.bf16.msra.mxu0 %v2129_v63  ;;  %v690_v63 = vld [vmem:[#allocation5 + $0x11d0] sm:$0xff]  ;;  %v1389_v42 = vld [vmem:[#allocation8 + $0x80] sm:$0xff] }
 0x128   :  { %2132 = vmatprep.subr.bf16.mxu0 %v2131_v1  ;;  %v2343_v1 = vpack.c.bf16 %v693_v58, %v687_v57  ;;  %v1376_v57 = vld [vmem:[#allocation8 + $0x18] sm:$0xff]  ;;  %v1373_v58 = vld [vmem:[#allocation8] sm:$0xff] }
 0x129   :  { %2322 = vmatpush1.bf16.msra.mxu1 %v2321_v0  ;;  %v686_v0 = vld [vmem:[#allocation5 + $0x11b0] sm:$0xff] }
 0x12a   :  { %2324 = vmatprep.subr.bf16.mxu1 %v2323_v5  ;;  %v2153_v5 = vpack.c.bf16 %v690_v63, %v684_v62  ;;  %v2345_v6 = vpack.c.bf16 %v692_v2, %v686_v0  ;;  %v2377_v62 = vpack.c.bf16 %v214_v52, %v208_v51  ;;  %v220_v63 = vld [vmem:[#allocation5 + $0x320] sm:$0xff]  ;;  %v226_v0 = vld [vmem:[#allocation5 + $0x350] sm:$0xff]  ;;  %v233_v2 = vld [vmem:[#allocation5 + $0x388] sm:$0xff] }
 0x12b   :  { %2134 = vmatpush1.bf16.msra.mxu0 %v2133_v11  ;;  %v143_v11 = vld [vmem:[#allocation5 + $0xb8] sm:$0xff]  ;;  %v1394_v52 = vld [vmem:[#allocation8 + $0xa8] sm:$0xff] }
 0x12c   :  { %2136 = vmatprep.subr.bf16.mxu0 %v2135_v13  ;;  %v2349_v13 = vpack.c.bf16 %v130_v9, %v124_v8  ;;  %v2351_v14 = vpack.c.bf16 %v143_v11, %v137_v10  ;;  %v2381_v10 = vpack.c.bf16 %v226_v0, %v220_v63  ;;  %v232_v11 = vld [vmem:[#allocation5 + $0x380] sm:$0xff]  ;;  %v287_v51 = vld [vmem:[#allocation5 + $0x538] sm:$0xff]  ;;  %v1398_v0 = vld [vmem:[#allocation8 + $0xc8] sm:$0xff] }
 0x12d   :  { %2326 = vmatpush1.bf16.msra.mxu1 %v2325_v12  ;;  %v118_v12 = vld [vmem:[#allocation2 + $0x20] sm:$0xff]  ;;  %v299_v63 = vld [vmem:[#allocation5 + $0x598] sm:$0xff] }
 0x12e   :  { %2328 = vmatprep.subr.bf16.mxu1 %v2327_v17  ;;  %v149_v17 = vld [vmem:[#allocation5 + $0xe8] sm:$0xff] }
 0x12f   :  { %2138 = vmatpush1.bf16.msra.mxu0 %v2137_v23  ;;  %v2355_v20 = vpack.c.bf16 %v155_v18, %v149_v17  ;;  %v2805_v23 = vld [vmem:[#allocation2 + $0x8] sm:$0xff]  ;;  %v1381_v18 = vld [vmem:[#allocation8 + $0x40] sm:$0xff] }
 0x130   :  { %2140 = vmatprep.subr.bf16.mxu0 %v2139_v25  ;;  %v167_v25 = vld [vmem:[#allocation5 + $0x178] sm:$0xff] }
 0x131   :  { %2330 = vmatpush1.bf16.msra.mxu1 %v2329_v24  ;;  %v161_v24 = vld [vmem:[#allocation5 + $0x148] sm:$0xff]  ;;  %v1384_v17 = vld [vmem:[#allocation8 + $0x58] sm:$0xff] }
 0x132   :  { %2332 = vmatprep.subr.bf16.mxu1 %v2331_v29  ;;  %v2359_v27 = vpack.c.bf16 %v167_v25, %v161_v24  ;;  %v166_v29 = vld [vmem:[#allocation5 + $0x170] sm:$0xff] }
 0x133   :  { %2142 = vmatpush1.bf16.msra.mxu0 %v2141_v35  ;;  %v2361_v32 = vpack.c.bf16 %v166_v29, %v160_v28  ;;  %v178_v35 = vld [vmem:[#allocation5 + $0x1d0] sm:$0xff]  ;;  %v1388_v29 = vld [vmem:[#allocation8 + $0x78] sm:$0xff] }
 0x134   :  { %2144 = vmatprep.subr.bf16.mxu0 %v2143_v37  ;;  %v191_v37 = vld [vmem:[#allocation5 + $0x238] sm:$0xff]  ;;  %v2365_v38 = vpack.c.bf16 %v178_v35, %v172_v34  ;;  %v250_v24 = vld [vmem:[#allocation5 + $0x410] sm:$0xff]  ;;  %v256_v35 = vld [vmem:[#allocation5 + $0x440] sm:$0xff] }
 0x135   :  { %2334 = vmatpush1.bf16.msra.mxu1 %v2333_v36  ;;  %v185_v36 = vld [vmem:[#allocation5 + $0x208] sm:$0xff] }
 0x136   :  { %2336 = vmatprep.subr.bf16.mxu1 %v2335_v41  ;;  %v2367_v39 = vpack.c.bf16 %v191_v37, %v185_v36  ;;  %v190_v41 = vld [vmem:[#allocation5 + $0x230] sm:$0xff] }
 0x137   :  { %2146 = vmatpush1.bf16.msra.mxu0 %v2145_v47  ;;  %v2369_v44 = vpack.c.bf16 %v190_v41, %v184_v40  ;;  %v202_v47 = vld [vmem:[#allocation5 + $0x290] sm:$0xff]  ;;  %v1392_v41 = vld [vmem:[#allocation8 + $0x98] sm:$0xff] }
 0x138   :  { %2148 = vmatprep.subr.bf16.mxu0 %v2147_v49  ;;  %v215_v49 = vld [vmem:[#allocation5 + $0x2f8] sm:$0xff]  ;;  %v2373_v50 = vpack.c.bf16 %v202_v47, %v196_v46  ;;  %v1386_v28 = vld [vmem:[#allocation8 + $0x68] sm:$0xff]  ;;  %v268_v47 = vld [vmem:[#allocation5 + $0x4a0] sm:$0xff] }
 0x139   :  { %2338 = vmatpush1.bf16.msra.mxu1 %v2337_v48  ;;  %v209_v48 = vld [vmem:[#allocation5 + $0x2c8] sm:$0xff]  ;;  %v262_v36 = vld [vmem:[#allocation5 + $0x470] sm:$0xff] }
 0x13a   :  { %2340 = vmatprep.subr.bf16.mxu1 %v2339_v53  ;;  %v2375_v53 = vpack.c.bf16 %v215_v49, %v209_v48  ;;  %v1390_v40 = vld [vmem:[#allocation8 + $0x88] sm:$0xff]  ;;  %v2393_v46 = vpack.c.bf16 %v262_v36, %v256_v35  ;;  %v335_v35 = vld [vmem:[#allocation5 + $0x6b8] sm:$0xff] }
 0x13b   :  { %2150 = vmatpush1.bf16.msra.mxu0 %v2149_v59  ;;  %v1375_v59 = vld [vmem:[#allocation8 + $0x10] sm:$0xff]  ;;  %v1410_v36 = vld [vmem:[#allocation8 + $0x128] sm:$0xff] }
 0x13c   :  { %2152 = vmatprep.subr.bf16.mxu0 %v2151_v61  ;;  %v2541_v61 = vpack.c.bf16 %v1375_v59, %v1373_v58  ;;  %v274_v48 = vld [vmem:[#allocation5 + $0x4d0] sm:$0xff]  ;;  %v280_v59 = vld [vmem:[#allocation5 + $0x500] sm:$0xff] }
 0x13d   :  { %2342 = vmatpush1.bf16.msra.mxu1 %v2341_v60  ;;  %v2539_v60 = vpack.c.bf16 %v1376_v57, %v1374_v56  ;;  %v2397_v58 = vpack.c.bf16 %v274_v48, %v268_v47  ;;  %v1414_v47 = vld [vmem:[#allocation8 + $0x148] sm:$0xff]  ;;  %v1416_v48 = vld [vmem:[#allocation8 + $0x158] sm:$0xff] }
 0x13e   :  { %2344 = vmatprep.subr.bf16.mxu1 %v2343_v1  ;;  %v2379_v1 = vpack.c.bf16 %v227_v55, %v221_v54  ;;  %v1393_v54 = vld [vmem:[#allocation8 + $0xa0] sm:$0xff]  ;;  %v1395_v55 = vld [vmem:[#allocation8 + $0xb0] sm:$0xff] }
 0x13f   :  { %2154 = vmatpush1.bf16.msra.mxu0 %v2153_v5  ;;  %v1380_v5 = vld [vmem:[#allocation8 + $0x38] sm:$0xff]  ;;  %v2561_v57 = vpack.c.bf16 %v1395_v55, %v1393_v54  ;;  %v1418_v55 = vld [vmem:[#allocation8 + $0x168] sm:$0xff] }
 0x140   :  { %2348 = vmatprep.subr.bf16.mxu0 %v2347_v7  ;;  %v1379_v7 = vld [vmem:[#allocation8 + $0x30] sm:$0xff]  ;;  %v2543_v8 = vpack.c.bf16 %v1380_v5, %v1378_v4 }
 0x141   :  { %2346 = vmatpush1.bf16.msra.mxu1 %v2345_v6  ;;  %v1377_v6 = vld [vmem:[#allocation8 + $0x20] sm:$0xff] }
 0x142   :  { %935 = vmatmul.mubr.f32.vlgmr.msra.gmra.mrb[0].mxu0 %v118_v12  ;;  %2540 = vmatprep.subr.bf16.mxu1 %v2539_v60  ;;  %v2545_v9 = vpack.c.bf16 %v1379_v7, %v1377_v6  ;;  %v286_v60 = vld [vmem:[#allocation5 + $0x530] sm:$0xff]  ;;  %v292_v7 = vld [vmem:[#allocation5 + $0x560] sm:$0xff] }
 0x143   :  { %2350 = vmatpush1.bf16.msra.mxu0 %v2349_v13  ;;  %1218 = vmatprep.mubr.f32.mxu0 %v2805_v23  ;;  %v2383_v13 = vpack.c.bf16 %v239_v3, %v233_v2  ;;  %v244_v23 = vld [vmem:[#allocation5 + $0x3e0] sm:$0xff]  ;;  %v1399_v3 = vld [vmem:[#allocation8 + $0xd0] sm:$0xff]  ;;  %v2401_v6 = vpack.c.bf16 %v286_v60, %v280_v59  ;;  %v2807_v59 = vld [vmem:[#allocation2 + $0x18] sm:$0xff] }
 0x144   :  { %1148 = vmatmul.mubr.f32.vlgmr.msra.gmra.mrb[0].mxu1 %v118_v12  ;;  %2352 = vmatprep.subr.bf16.mxu0 %v2351_v14  ;;  %v238_v12 = vld [vmem:[#allocation5 + $0x3b0] sm:$0xff]  ;;  %v245_v14 = vld [vmem:[#allocation5 + $0x3e8] sm:$0xff]  ;;  %v2389_v34 = vpack.c.bf16 %v250_v24, %v244_v23  ;;  %v323_v23 = vld [vmem:[#allocation5 + $0x658] sm:$0xff] }
 0x145   :  { %2542 = vmatpush1.bf16.msra.mxu1 %v2541_v61  ;;  %v2385_v22 = vpack.c.bf16 %v238_v12, %v232_v11  ;;  %v2387_v25 = vpack.c.bf16 %v251_v15, %v245_v14  ;;  %v1397_v2 = vld [vmem:[#allocation8 + $0xc0] sm:$0xff]  ;;  %v311_v11 = vld [vmem:[#allocation5 + $0x5f8] sm:$0xff]  ;;  %v1402_v12 = vld [vmem:[#allocation8 + $0xe8] sm:$0xff] }
 0x146   :  { %2544 = vmatprep.subr.bf16.mxu1 %v2543_v8  ;;  %v2565_v5 = vpack.c.bf16 %v1399_v3, %v1397_v2  ;;  %v298_v8 = vld [vmem:[#allocation5 + $0x590] sm:$0xff]  ;;  %v1401_v14 = vld [vmem:[#allocation8 + $0xe0] sm:$0xff] }
 0x147   :  { %2354 = vmatpush1.bf16.msra.mxu0 %v2353_v19  ;;  %v1383_v19 = vld [vmem:[#allocation8 + $0x50] sm:$0xff]  ;;  %v1406_v24 = vld [vmem:[#allocation8 + $0x108] sm:$0xff] }
 0x148   :  { %2356 = vmatprep.subr.bf16.mxu0 %v2355_v20  ;;  %v2547_v20 = vpack.c.bf16 %v1384_v17, %v1382_v16  ;;  %v2549_v21 = vpack.c.bf16 %v1383_v19, %v1381_v18  ;;  %v1403_v15 = vld [vmem:[#allocation8 + $0xf0] sm:$0xff]  ;;  %v2405_v18 = vpack.c.bf16 %v298_v8, %v292_v7  ;;  %v304_v19 = vld [vmem:[#allocation5 + $0x5c0] sm:$0xff]  ;;  %v353_v3 = vld [vmem:[#allocation5 + $0x748] sm:$0xff] }
 0x149   :  { %2546 = vmatpush1.bf16.msra.mxu1 %v2545_v9  ;;  %v2569_v17 = vpack.c.bf16 %v1403_v15, %v1401_v14  ;;  %v346_v2 = vld [vmem:[#allocation5 + $0x710] sm:$0xff]  ;;  %v1421_v7 = vld [vmem:[#allocation8 + $0x180] sm:$0xff] }
 0x14a   :  { %2548 = vmatprep.subr.bf16.mxu1 %v2547_v20  ;;  %v310_v20 = vld [vmem:[#allocation5 + $0x5f0] sm:$0xff]  ;;  %v365_v15 = vld [vmem:[#allocation5 + $0x7a8] sm:$0xff] }
 0x14b   :  { %2358 = vmatpush1.bf16.msra.mxu0 %v2357_v26  ;;  %v257_v26 = vld [vmem:[#allocation5 + $0x448] sm:$0xff]  ;;  %v1423_v8 = vld [vmem:[#allocation8 + $0x190] sm:$0xff] }
 0x14c   :  { %2360 = vmatprep.subr.bf16.mxu0 %v2359_v27  ;;  %v263_v27 = vld [vmem:[#allocation5 + $0x478] sm:$0xff]  ;;  %v358_v14 = vld [vmem:[#allocation5 + $0x770] sm:$0xff] }
 0x14d   :  { %2550 = vmatpush1.bf16.msra.mxu1 %v2549_v21  ;;  %v2391_v37 = vpack.c.bf16 %v263_v27, %v257_v26  ;;  %v1405_v26 = vld [vmem:[#allocation8 + $0x100] sm:$0xff]  ;;  %v1407_v27 = vld [vmem:[#allocation8 + $0x110] sm:$0xff] }
 0x14f   :  { %2362 = vmatpush1.bf16.msra.mxu0 %v2361_v32  ;;  %v2551_v32 = vpack.c.bf16 %v1388_v29, %v1386_v28  ;;  %v2573_v29 = vpack.c.bf16 %v1407_v27, %v1405_v26  ;;  %v370_v26 = vld [vmem:[#allocation5 + $0x7d0] sm:$0xff]  ;;  %v377_v27 = vld [vmem:[#allocation5 + $0x808] sm:$0xff] }
 0x150   :  { %2364 = vmatprep.subr.bf16.mxu0 %v2363_v33  ;;  %v2553_v33 = vpack.c.bf16 %v1387_v31, %v1385_v30  ;;  %v2409_v30 = vpack.c.bf16 %v310_v20, %v304_v19  ;;  %v316_v31 = vld [vmem:[#allocation5 + $0x620] sm:$0xff]  ;;  %v1427_v20 = vld [vmem:[#allocation8 + $0x1b0] sm:$0xff] }
 0x151   :  { %2552 = vmatprep.subr.bf16.mxu1 %v2551_v32  ;;  %v322_v32 = vld [vmem:[#allocation5 + $0x650] sm:$0xff]  ;;  %v1425_v19 = vld [vmem:[#allocation8 + $0x1a0] sm:$0xff] }
 0x152   :  { %2554 = vmatpush1.bf16.msra.mxu1 %v2553_v33 }
 0x153   :  { %2366 = vmatpush1.bf16.msra.mxu0 %v2365_v38  ;;  %v269_v38 = vld [vmem:[#allocation5 + $0x4a8] sm:$0xff] }
 0x154   :  { %2368 = vmatprep.subr.bf16.mxu0 %v2367_v39  ;;  %v275_v39 = vld [vmem:[#allocation5 + $0x4d8] sm:$0xff] }
 0x155   :  { %v2395_v49 = vpack.c.bf16 %v275_v39, %v269_v38  ;;  %v1409_v38 = vld [vmem:[#allocation8 + $0x120] sm:$0xff]  ;;  %v1411_v39 = vld [vmem:[#allocation8 + $0x130] sm:$0xff] }
 0x157   :  { %2370 = vmatpush1.bf16.msra.mxu0 %v2369_v44  ;;  %v2555_v44 = vpack.c.bf16 %v1392_v41, %v1390_v40  ;;  %v2577_v41 = vpack.c.bf16 %v1411_v39, %v1409_v38  ;;  %v395_v38 = vld [vmem:[#allocation5 + $0x898] sm:$0xff] }
 0x158   :  { %2372 = vmatprep.subr.bf16.mxu0 %v2371_v45  ;;  %v2557_v45 = vpack.c.bf16 %v1391_v43, %v1389_v42  ;;  %v2413_v42 = vpack.c.bf16 %v322_v32, %v316_v31  ;;  %v328_v43 = vld [vmem:[#allocation5 + $0x680] sm:$0xff]  ;;  %v1431_v32 = vld [vmem:[#allocation8 + $0x1d0] sm:$0xff] }
 0x159   :  { %2556 = vmatprep.subr.bf16.mxu1 %v2555_v44  ;;  %v334_v44 = vld [vmem:[#allocation5 + $0x6b0] sm:$0xff]  ;;  %v1429_v31 = vld [vmem:[#allocation8 + $0x1c0] sm:$0xff] }
 0x15a   :  { %2558 = vmatpush1.bf16.msra.mxu1 %v2557_v45  ;;  %v2597_v39 = vpack.c.bf16 %v1431_v32, %v1429_v31  ;;  %v485_v31 = vld [vmem:[#allocation5 + $0xb68] sm:$0xff]  ;;  %v491_v32 = vld [vmem:[#allocation5 + $0xb98] sm:$0xff] }
 0x15b   :  { %2374 = vmatpush1.bf16.msra.mxu0 %v2373_v50  ;;  %v281_v50 = vld [vmem:[#allocation5 + $0x508] sm:$0xff] }
 0x15c   :  { %2376 = vmatprep.subr.bf16.mxu0 %v2375_v53  ;;  %v1396_v53 = vld [vmem:[#allocation8 + $0xb8] sm:$0xff]  ;;  %v2399_v61 = vpack.c.bf16 %v287_v51, %v281_v50  ;;  %v2579_v50 = vpack.c.bf16 %v1416_v48, %v1414_v47  ;;  %v1413_v51 = vld [vmem:[#allocation8 + $0x140] sm:$0xff] }
 0x15d   :  { %v2559_v56 = vpack.c.bf16 %v1396_v53, %v1394_v52  ;;  %v1415_v52 = vld [vmem:[#allocation8 + $0x150] sm:$0xff] }
 0x15e   :  { %v2806_v53 = vld [vmem:[#allocation2] sm:$0xff]  ;;  %v2581_v54 = vpack.c.bf16 %v1415_v52, %v1413_v51  ;;  %v407_v47 = vld [vmem:[#allocation5 + $0x8f8] sm:$0xff] }
 0x15f   :  { %2378 = vmatpush1.bf16.msra.mxu0 %v2377_v62  ;;  %v293_v62 = vld [vmem:[#allocation5 + $0x568] sm:$0xff]  ;;  %2560 = vmatprep.subr.bf16.mxu1 %v2559_v56  ;;  %v1420_v56 = vld [vmem:[#allocation8 + $0x178] sm:$0xff] }
 0x160   :  { %2380 = vmatprep.subr.bf16.mxu0 %v2379_v1  ;;  %2562 = vmatpush1.bf16.msra.mxu1 %v2561_v57  ;;  %v1400_v1 = vld [vmem:[#allocation8 + $0xd8] sm:$0xff]  ;;  %v2403_v9 = vpack.c.bf16 %v299_v63, %v293_v62  ;;  %v1417_v57 = vld [vmem:[#allocation8 + $0x160] sm:$0xff]  ;;  %v2583_v60 = vpack.c.bf16 %v1420_v56, %v1418_v55  ;;  %v1422_v62 = vld [vmem:[#allocation8 + $0x188] sm:$0xff] }
 0x161   :  { %v2563_v4 = vpack.c.bf16 %v1400_v1, %v1398_v0  ;;  %v1424_v63 = vld [vmem:[#allocation8 + $0x198] sm:$0xff]  ;;  %v406_v55 = vld [vmem:[#allocation5 + $0x8f0] sm:$0xff] }
 0x162   :  { %v340_v1 = vld [vmem:[#allocation5 + $0x6e0] sm:$0xff]  ;;  %v1438_v56 = vld [vmem:[#allocation8 + $0x208] sm:$0xff] }
 0x163   :  { %2382 = vmatpush1.bf16.msra.mxu0 %v2381_v10  ;;  %v305_v10 = vld [vmem:[#allocation5 + $0x5c8] sm:$0xff]  ;;  %2564 = vmatprep.subr.bf16.mxu1 %v2563_v4  ;;  %v359_v4 = vld [vmem:[#allocation5 + $0x778] sm:$0xff] }
 0x164   :  { %2384 = vmatprep.subr.bf16.mxu0 %v2383_v13  ;;  %2566 = vmatpush1.bf16.msra.mxu1 %v2565_v5  ;;  %v1404_v13 = vld [vmem:[#allocation8 + $0xf8] sm:$0xff]  ;;  %v2407_v21 = vpack.c.bf16 %v311_v11, %v305_v10  ;;  %v1426_v10 = vld [vmem:[#allocation8 + $0x1a8] sm:$0xff] }
 0x165   :  { %v2567_v16 = vpack.c.bf16 %v1404_v13, %v1402_v12  ;;  %v1428_v11 = vld [vmem:[#allocation8 + $0x1b8] sm:$0xff]  ;;  %v2423_v12 = vpack.c.bf16 %v359_v4, %v353_v3 }
 0x166   :  { %v352_v13 = vld [vmem:[#allocation5 + $0x740] sm:$0xff] }
 0x167   :  { %2386 = vmatpush1.bf16.msra.mxu0 %v2385_v22  ;;  %v317_v22 = vld [vmem:[#allocation5 + $0x628] sm:$0xff]  ;;  %2568 = vmatprep.subr.bf16.mxu1 %v2567_v16  ;;  %v371_v16 = vld [vmem:[#allocation5 + $0x7d8] sm:$0xff] }
 0x168   :  { %2388 = vmatprep.subr.bf16.mxu0 %v2387_v25  ;;  %2570 = vmatpush1.bf16.msra.mxu1 %v2569_v17  ;;  %v1408_v25 = vld [vmem:[#allocation8 + $0x118] sm:$0xff]  ;;  %v2411_v33 = vpack.c.bf16 %v323_v23, %v317_v22  ;;  %v2589_v17 = vpack.c.bf16 %v1423_v8, %v1421_v7  ;;  %v1430_v22 = vld [vmem:[#allocation8 + $0x1c8] sm:$0xff] }
 0x169   :  { %v2571_v28 = vpack.c.bf16 %v1408_v25, %v1406_v24  ;;  %v1432_v23 = vld [vmem:[#allocation8 + $0x1d8] sm:$0xff]  ;;  %v2427_v24 = vpack.c.bf16 %v371_v16, %v365_v15  ;;  %v437_v7 = vld [vmem:[#allocation5 + $0x9e8] sm:$0xff] }
 0x16a   :  { %v364_v25 = vld [vmem:[#allocation5 + $0x7a0] sm:$0xff]  ;;  %v443_v8 = vld [vmem:[#allocation5 + $0xa18] sm:$0xff] }
 0x16b   :  { %2390 = vmatpush1.bf16.msra.mxu0 %v2389_v34  ;;  %v329_v34 = vld [vmem:[#allocation5 + $0x688] sm:$0xff]  ;;  %2572 = vmatprep.subr.bf16.mxu1 %v2571_v28  ;;  %v383_v28 = vld [vmem:[#allocation5 + $0x838] sm:$0xff] }
 0x16c   :  { %2392 = vmatprep.subr.bf16.mxu0 %v2391_v37  ;;  %2574 = vmatpush1.bf16.msra.mxu1 %v2573_v29  ;;  %v1412_v37 = vld [vmem:[#allocation8 + $0x138] sm:$0xff]  ;;  %v2415_v45 = vpack.c.bf16 %v335_v35, %v329_v34  ;;  %v2593_v29 = vpack.c.bf16 %v1427_v20, %v1425_v19  ;;  %v2431_v34 = vpack.c.bf16 %v383_v28, %v377_v27  ;;  %v461_v19 = vld [vmem:[#allocation5 + $0xaa8] sm:$0xff] }
 0x16d   :  { %v2575_v40 = vpack.c.bf16 %v1412_v37, %v1410_v36  ;;  %v376_v35 = vld [vmem:[#allocation5 + $0x800] sm:$0xff]  ;;  %v382_v36 = vld [vmem:[#allocation5 + $0x830] sm:$0xff]  ;;  %v389_v37 = vld [vmem:[#allocation5 + $0x868] sm:$0xff] }
 0x16e   :  { %v467_v20 = vld [vmem:[#allocation5 + $0xad8] sm:$0xff] }
 0x16f   :  { %2394 = vmatpush1.bf16.msra.mxu0 %v2393_v46  ;;  %v341_v46 = vld [vmem:[#allocation5 + $0x6e8] sm:$0xff]  ;;  %2576 = vmatprep.subr.bf16.mxu1 %v2575_v40  ;;  %v2433_v40 = vpack.c.bf16 %v382_v36, %v376_v35  ;;  %v484_v35 = vld [vmem:[#allocation5 + $0xb60] sm:$0xff]  ;;  %v490_v36 = vld [vmem:[#allocation5 + $0xb90] sm:$0xff] }
 0x170   :  { %2396 = vmatprep.subr.bf16.mxu0 %v2395_v49  ;;  %v347_v49 = vld [vmem:[#allocation5 + $0x718] sm:$0xff]  ;;  %2578 = vmatpush1.bf16.msra.mxu1 %v2577_v41  ;;  %v388_v41 = vld [vmem:[#allocation5 + $0x860] sm:$0xff] }
 0x171   :  { %v2419_v0 = vpack.c.bf16 %v347_v49, %v341_v46  ;;  %2580 = vmatprep.subr.bf16.mxu1 %v2579_v50  ;;  %v1436_v46 = vld [vmem:[#allocation8 + $0x1f8] sm:$0xff]  ;;  %v1433_v49 = vld [vmem:[#allocation8 + $0x1e0] sm:$0xff]  ;;  %v1435_v50 = vld [vmem:[#allocation8 + $0x1f0] sm:$0xff] }
 0x172   :  { %v2601_v51 = vpack.c.bf16 %v1435_v50, %v1433_v49  ;;  %v521_v49 = vld [vmem:[#allocation5 + $0xc88] sm:$0xff]  ;;  %v527_v50 = vld [vmem:[#allocation5 + $0xcb8] sm:$0xff] }
 0x173   :  { %2398 = vmatpush1.bf16.msra.mxu0 %v2397_v58  ;;  %v2417_v58 = vpack.c.bf16 %v334_v44, %v328_v43  ;;  %v2435_v43 = vpack.c.bf16 %v395_v38, %v389_v37  ;;  %v401_v44 = vld [vmem:[#allocation5 + $0x8c8] sm:$0xff]  ;;  %v503_v38 = vld [vmem:[#allocation5 + $0xbf8] sm:$0xff] }
 0x174   :  { %2400 = vmatprep.subr.bf16.mxu0 %v2399_v61  ;;  %v1419_v61 = vld [vmem:[#allocation8 + $0x170] sm:$0xff]  ;;  %2582 = vmatpush1.bf16.msra.mxu1 %v2581_v54  ;;  %v2439_v54 = vpack.c.bf16 %v407_v47, %v401_v44  ;;  %v497_v37 = vld [vmem:[#allocation5 + $0xbc8] sm:$0xff]  ;;  %v508_v47 = vld [vmem:[#allocation5 + $0xc20] sm:$0xff] }
 0x175   :  { %v2585_v5 = vpack.c.bf16 %v1419_v61, %v1417_v57  ;;  %2584 = vmatprep.subr.bf16.mxu1 %v2583_v60  ;;  %v1440_v57 = vld [vmem:[#allocation8 + $0x218] sm:$0xff] }
 0x176   :  { %v2603_v60 = vpack.c.bf16 %v1440_v57, %v1438_v56  ;;  %v515_v44 = vld [vmem:[#allocation5 + $0xc58] sm:$0xff]  ;;  %v2808_v57 = vld [vmem:[#allocation2 + $0x10] sm:$0xff] }
 0x177   :  { %2402 = vmatpush1.bf16.msra.mxu0 %v2401_v6  ;;  %v2587_v6 = vpack.c.bf16 %v1424_v63, %v1422_v62  ;;  %v412_v63 = vld [vmem:[#allocation5 + $0x920] sm:$0xff]  ;;  %v539_v56 = vld [vmem:[#allocation5 + $0xd18] sm:$0xff] }
 0x178   :  { %2404 = vmatprep.subr.bf16.mxu0 %v2403_v9  ;;  %v2421_v9 = vpack.c.bf16 %v346_v2, %v340_v1  ;;  %2586 = vmatpush1.bf16.msra.mxu1 %v2585_v5  ;;  %v425_v1 = vld [vmem:[#allocation5 + $0x988] sm:$0xff]  ;;  %v431_v2 = vld [vmem:[#allocation5 + $0x9b8] sm:$0xff]  ;;  %v424_v5 = vld [vmem:[#allocation5 + $0x980] sm:$0xff] }
 0x179   :  { %2588 = vmatprep.subr.bf16.mxu1 %v2587_v6  ;;  %v2447_v4 = vpack.c.bf16 %v431_v2, %v425_v1  ;;  %v430_v6 = vld [vmem:[#allocation5 + $0x9b0] sm:$0xff] }
 0x17b   :  { %2406 = vmatpush1.bf16.msra.mxu0 %v2405_v18  ;;  %v2591_v18 = vpack.c.bf16 %v1428_v11, %v1426_v10  ;;  %v2451_v10 = vpack.c.bf16 %v443_v8, %v437_v7  ;;  %v436_v11 = vld [vmem:[#allocation5 + $0x9e0] sm:$0xff] }
 0x17c   :  { %2408 = vmatprep.subr.bf16.mxu0 %v2407_v21  ;;  %v2425_v21 = vpack.c.bf16 %v358_v14, %v352_v13  ;;  %2590 = vmatpush1.bf16.msra.mxu1 %v2589_v17  ;;  %v449_v13 = vld [vmem:[#allocation5 + $0xa48] sm:$0xff]  ;;  %v455_v14 = vld [vmem:[#allocation5 + $0xa78] sm:$0xff]  ;;  %v448_v17 = vld [vmem:[#allocation5 + $0xa40] sm:$0xff] }
 0x17d   :  { %2592 = vmatprep.subr.bf16.mxu1 %v2591_v18  ;;  %v2455_v16 = vpack.c.bf16 %v455_v14, %v449_v13  ;;  %v454_v18 = vld [vmem:[#allocation5 + $0xa70] sm:$0xff] }
 0x17f   :  { %2410 = vmatpush1.bf16.msra.mxu0 %v2409_v30  ;;  %v2595_v30 = vpack.c.bf16 %v1432_v23, %v1430_v22  ;;  %v2459_v22 = vpack.c.bf16 %v467_v20, %v461_v19  ;;  %v460_v23 = vld [vmem:[#allocation5 + $0xaa0] sm:$0xff] }
 0x180   :  { %2412 = vmatprep.subr.bf16.mxu0 %v2411_v33  ;;  %v2429_v33 = vpack.c.bf16 %v370_v26, %v364_v25  ;;  %2594 = vmatpush1.bf16.msra.mxu1 %v2593_v29  ;;  %v473_v25 = vld [vmem:[#allocation5 + $0xb08] sm:$0xff]  ;;  %v479_v26 = vld [vmem:[#allocation5 + $0xb38] sm:$0xff]  ;;  %v472_v29 = vld [vmem:[#allocation5 + $0xb00] sm:$0xff] }
 0x181   :  { %2596 = vmatprep.subr.bf16.mxu1 %v2595_v30  ;;  %v2463_v28 = vpack.c.bf16 %v479_v26, %v473_v25  ;;  %v478_v30 = vld [vmem:[#allocation5 + $0xb30] sm:$0xff] }
 0x182   :  { %1219 = vmatmul.mubr.f32.vlgmr.msra.gmra.mrb[2].mxu0 %v2806_v53  ;;  %v400_v53 = vld [vmem:[#allocation5 + $0x8c0] sm:$0xff] }
 0x183   :  { %2414 = vmatpush1.bf16.msra.mxu0 %v2413_v42  ;;  %1289 = vmatprep.mubr.f32.mxu0 %v2807_v59  ;;  %v394_v42 = vld [vmem:[#allocation5 + $0x890] sm:$0xff]  ;;  %v419_v59 = vld [vmem:[#allocation5 + $0x958] sm:$0xff]  ;;  %v2441_v61 = vpack.c.bf16 %v406_v55, %v400_v53  ;;  %v520_v53 = vld [vmem:[#allocation5 + $0xc80] sm:$0xff] }
 0x184   :  { %2416 = vmatprep.subr.bf16.mxu0 %v2415_v45  ;;  %v1434_v45 = vld [vmem:[#allocation8 + $0x1e8] sm:$0xff]  ;;  %2598 = vmatpush1.bf16.msra.mxu1 %v2597_v39  ;;  %v2437_v52 = vpack.c.bf16 %v394_v42, %v388_v41  ;;  %v2469_v39 = vpack.c.bf16 %v490_v36, %v484_v35  ;;  %v496_v41 = vld [vmem:[#allocation5 + $0xbc0] sm:$0xff]  ;;  %v623_v36 = vld [vmem:[#allocation5 + $0xfb8] sm:$0xff] }
 0x185   :  { %v2599_v48 = vpack.c.bf16 %v1436_v46, %v1434_v45  ;;  %v502_v42 = vld [vmem:[#allocation5 + $0xbf0] sm:$0xff]  ;;  %v533_v55 = vld [vmem:[#allocation5 + $0xce8] sm:$0xff] }
 0x186   :  { %v2473_v45 = vpack.c.bf16 %v502_v42, %v496_v41  ;;  %v617_v35 = vld [vmem:[#allocation5 + $0xf88] sm:$0xff]  ;;  %v635_v42 = vld [vmem:[#allocation5 + $0x1018] sm:$0xff] }
 0x187   :  { %2418 = vmatpush1.bf16.msra.mxu0 %v2417_v58  ;;  %2600 = vmatprep.subr.bf16.mxu1 %v2599_v48  ;;  %v413_v58 = vld [vmem:[#allocation5 + $0x928] sm:$0xff]  ;;  %v514_v48 = vld [vmem:[#allocation5 + $0xc50] sm:$0xff] }
 0x188   :  { %2420 = vmatprep.subr.bf16.mxu0 %v2419_v0  ;;  %2602 = vmatpush1.bf16.msra.mxu1 %v2601_v51  ;;  %v2443_v62 = vpack.c.bf16 %v419_v59, %v413_v58  ;;  %v418_v0 = vld [vmem:[#allocation5 + $0x950] sm:$0xff]  ;;  %v2477_v51 = vpack.c.bf16 %v514_v48, %v508_v47  ;;  %v2809_v59 = vld [vmem:[#allocation2 + $0x28] sm:$0xff]  ;;  %v629_v41 = vld [vmem:[#allocation5 + $0xfe8] sm:$0xff] }
 0x189   :  { %2604 = vmatprep.subr.bf16.mxu1 %v2603_v60  ;;  %v2445_v3 = vpack.c.bf16 %v418_v0, %v412_v63  ;;  %v2483_v60 = vpack.c.bf16 %v539_v56, %v533_v55  ;;  %v545_v63 = vld [vmem:[#allocation5 + $0xd48] sm:$0xff]  ;;  %v551_v0 = vld [vmem:[#allocation5 + $0xd78] sm:$0xff] }
 0x18a   :  { %v2487_v2 = vpack.c.bf16 %v551_v0, %v545_v63  ;;  %v641_v47 = vld [vmem:[#allocation5 + $0x1048] sm:$0xff]  ;;  %v647_v48 = vld [vmem:[#allocation5 + $0x1078] sm:$0xff]  ;;  %v664_v63 = vld [vmem:[#allocation5 + $0x1100] sm:$0xff] }
 0x18b   :  { %2422 = vmatpush1.bf16.msra.mxu0 %v2421_v9  ;;  %v2449_v9 = vpack.c.bf16 %v430_v6, %v424_v5  ;;  %v557_v5 = vld [vmem:[#allocation5 + $0xda8] sm:$0xff]  ;;  %v563_v6 = vld [vmem:[#allocation5 + $0xdd8] sm:$0xff]  ;;  %v670_v0 = vld [vmem:[#allocation5 + $0x1130] sm:$0xff] }
 0x18c   :  { %2424 = vmatprep.subr.bf16.mxu0 %v2423_v12  ;;  %v442_v12 = vld [vmem:[#allocation5 + $0xa10] sm:$0xff]  ;;  %v2491_v8 = vpack.c.bf16 %v563_v6, %v557_v5  ;;  %v676_v5 = vld [vmem:[#allocation5 + $0x1160] sm:$0xff] }
 0x18d   :  { %v2453_v15 = vpack.c.bf16 %v442_v12, %v436_v11  ;;  %v569_v11 = vld [vmem:[#allocation5 + $0xe08] sm:$0xff]  ;;  %v575_v12 = vld [vmem:[#allocation5 + $0xe38] sm:$0xff]  ;;  %v682_v6 = vld [vmem:[#allocation5 + $0x1190] sm:$0xff] }
 0x18e   :  { %v2495_v14 = vpack.c.bf16 %v575_v12, %v569_v11  ;;  %v688_v11 = vld [vmem:[#allocation5 + $0x11c0] sm:$0xff]  ;;  %v694_v12 = vld [vmem:[#allocation5 + $0x11f0] sm:$0xff] }
 0x18f   :  { %2426 = vmatpush1.bf16.msra.mxu0 %v2425_v21  ;;  %v2457_v21 = vpack.c.bf16 %v454_v18, %v448_v17  ;;  %v581_v17 = vld [vmem:[#allocation5 + $0xe68] sm:$0xff]  ;;  %v587_v18 = vld [vmem:[#allocation5 + $0xe98] sm:$0xff] }
 0x190   :  { %2428 = vmatprep.subr.bf16.mxu0 %v2427_v24  ;;  %v466_v24 = vld [vmem:[#allocation5 + $0xad0] sm:$0xff]  ;;  %v2499_v20 = vpack.c.bf16 %v587_v18, %v581_v17  ;;  %v3138_v18 = vld [vmem:[#allocation7] sm:$0x3f] }
 0x191   :  { %v2461_v27 = vpack.c.bf16 %v466_v24, %v460_v23  ;;  %v593_v23 = vld [vmem:[#allocation5 + $0xec8] sm:$0xff]  ;;  %v599_v24 = vld [vmem:[#allocation5 + $0xef8] sm:$0xff] }
 0x192   :  { %v2503_v26 = vpack.c.bf16 %v599_v24, %v593_v23 }
 0x193   :  { %2430 = vmatpush1.bf16.msra.mxu0 %v2429_v33  ;;  %v2465_v33 = vpack.c.bf16 %v478_v30, %v472_v29  ;;  %v605_v29 = vld [vmem:[#allocation5 + $0xf28] sm:$0xff]  ;;  %v611_v30 = vld [vmem:[#allocation5 + $0xf58] sm:$0xff] }
 0x194   :  { %2432 = vmatprep.subr.bf16.mxu0 %v2431_v34  ;;  %v2467_v34 = vpack.c.bf16 %v491_v32, %v485_v31  ;;  %v2507_v32 = vpack.c.bf16 %v611_v30, %v605_v29  ;;  %v1439_v29 = vld [vmem:[#allocation8 + $0x210] sm:$0xff] }
 0x197   :  { %2434 = vmatpush1.bf16.msra.mxu0 %v2433_v40  ;;  %v2471_v40 = vpack.c.bf16 %v503_v38, %v497_v37  ;;  %v2511_v38 = vpack.c.bf16 %v623_v36, %v617_v35 }
 0x198   :  { %2436 = vmatprep.subr.bf16.mxu0 %v2435_v43  ;;  %v509_v43 = vld [vmem:[#allocation5 + $0xc28] sm:$0xff] }
 0x199   :  { %v2475_v46 = vpack.c.bf16 %v515_v44, %v509_v43  ;;  %v2515_v44 = vpack.c.bf16 %v635_v42, %v629_v41  ;;  %v1443_v41 = vld [vmem:[#allocation8 + $0x230] sm:$0xff]  ;;  %v1446_v42 = vld [vmem:[#allocation8 + $0x248] sm:$0xff] }
 0x19b   :  { %2438 = vmatpush1.bf16.msra.mxu0 %v2437_v52  ;;  %v2479_v52 = vpack.c.bf16 %v527_v50, %v521_v49  ;;  %v2519_v50 = vpack.c.bf16 %v647_v48, %v641_v47  ;;  %v1447_v47 = vld [vmem:[#allocation8 + $0x250] sm:$0xff]  ;;  %v1450_v48 = vld [vmem:[#allocation8 + $0x268] sm:$0xff] }
 0x19c   :  { %2440 = vmatprep.subr.bf16.mxu0 %v2439_v54  ;;  %v526_v54 = vld [vmem:[#allocation5 + $0xcb0] sm:$0xff] }
 0x19d   :  { %v2481_v58 = vpack.c.bf16 %v526_v54, %v520_v53  ;;  %v653_v53 = vld [vmem:[#allocation5 + $0x10a8] sm:$0xff]  ;;  %v659_v54 = vld [vmem:[#allocation5 + $0x10d8] sm:$0xff] }
 0x19e   :  { %v2523_v56 = vpack.c.bf16 %v659_v54, %v653_v53  ;;  %v1451_v53 = vld [vmem:[#allocation8 + $0x270] sm:$0xff]  ;;  %v1454_v54 = vld [vmem:[#allocation8 + $0x288] sm:$0xff] }
 0x19f   :  { %2442 = vmatpush1.bf16.msra.mxu0 %v2441_v61  ;;  %v532_v61 = vld [vmem:[#allocation5 + $0xce0] sm:$0xff] }
 0x1a0   :  { %2444 = vmatprep.subr.bf16.mxu0 %v2443_v62  ;;  %v538_v62 = vld [vmem:[#allocation5 + $0xd10] sm:$0xff] }
 0x1a1   :  { %v2485_v1 = vpack.c.bf16 %v538_v62, %v532_v61 }
 0x1a3   :  { %2446 = vmatpush1.bf16.msra.mxu0 %v2445_v3  ;;  %v544_v3 = vld [vmem:[#allocation5 + $0xd40] sm:$0xff] }
 0x1a4   :  { %2448 = vmatprep.subr.bf16.mxu0 %v2447_v4  ;;  %v550_v4 = vld [vmem:[#allocation5 + $0xd70] sm:$0xff] }
 0x1a5   :  { %v2489_v7 = vpack.c.bf16 %v550_v4, %v544_v3  ;;  %v2529_v3 = vpack.c.bf16 %v670_v0, %v664_v63  ;;  %v1457_v0 = vld [vmem:[#allocation8 + $0x2a0] sm:$0xff] }
 0x1a7   :  { %2450 = vmatpush1.bf16.msra.mxu0 %v2449_v9  ;;  %v556_v9 = vld [vmem:[#allocation5 + $0xda0] sm:$0xff] }
 0x1a8   :  { %2452 = vmatprep.subr.bf16.mxu0 %v2451_v10  ;;  %v562_v10 = vld [vmem:[#allocation5 + $0xdd0] sm:$0xff] }
 0x1a9   :  { %v2493_v13 = vpack.c.bf16 %v562_v10, %v556_v9  ;;  %v2533_v9 = vpack.c.bf16 %v682_v6, %v676_v5  ;;  %v1461_v6 = vld [vmem:[#allocation8 + $0x2c0] sm:$0xff] }
 0x1ab   :  { %2454 = vmatpush1.bf16.msra.mxu0 %v2453_v15  ;;  %v568_v15 = vld [vmem:[#allocation5 + $0xe00] sm:$0xff] }
 0x1ac   :  { %2456 = vmatprep.subr.bf16.mxu0 %v2455_v16  ;;  %v574_v16 = vld [vmem:[#allocation5 + $0xe30] sm:$0xff] }
 0x1ad   :  { %v2497_v19 = vpack.c.bf16 %v574_v16, %v568_v15  ;;  %v698_v15 = vlaneseq }
 0x1af   :  { %2458 = vmatpush1.bf16.msra.mxu0 %v2457_v21  ;;  %v580_v21 = vld [vmem:[#allocation5 + $0xe60] sm:$0xff]  ;;  %v3135_v16 = vshrl.u32 %v698_v15, 7 }
 0x1b0   :  { %2460 = vmatprep.subr.bf16.mxu0 %v2459_v22  ;;  %v586_v22 = vld [vmem:[#allocation5 + $0xe90] sm:$0xff]  ;;  %v1472_v15 = vld [vmem:[#allocation8 + $0x318] sm:$0xff] }
 0x1b1   :  { %v2501_v25 = vpack.c.bf16 %v586_v22, %v580_v21  ;;  %v700_v17 = vsub.s32 0, %v3135_v16 }
 0x1b3   :  { %2462 = vmatpush1.bf16.msra.mxu0 %v2461_v27  ;;  %v592_v27 = vld [vmem:[#allocation5 + $0xec0] sm:$0xff]  ;;  %v701_v21 = vrot.slane %v3138_v18, %v700_v17 }
 0x1b4   :  { %2464 = vmatprep.subr.bf16.mxu0 %v2463_v28  ;;  %v598_v28 = vld [vmem:[#allocation5 + $0xef0] sm:$0xff] }
 0x1b5   :  { %v2505_v31 = vpack.c.bf16 %v598_v28, %v592_v27  ;;  %v1437_v28 = vld [vmem:[#allocation8 + $0x200] sm:$0xff] }
 0x1b6   :  { %v2605_v36 = vpack.c.bf16 %v1439_v29, %v1437_v28  ;;  %v1473_v29 = vld [vmem:[#allocation8 + $0x320] sm:$0xff] }
 0x1b7   :  { %2466 = vmatpush1.bf16.msra.mxu0 %v2465_v33  ;;  %v604_v33 = vld [vmem:[#allocation5 + $0xf20] sm:$0xff] }
 0x1b8   :  { %2468 = vmatprep.subr.bf16.mxu0 %v2467_v34  ;;  %v610_v34 = vld [vmem:[#allocation5 + $0xf50] sm:$0xff] }
 0x1b9   :  { %v2509_v37 = vpack.c.bf16 %v610_v34, %v604_v33  ;;  %v1444_v33 = vld [vmem:[#allocation8 + $0x238] sm:$0xff] }
 0x1bb   :  { %2470 = vmatpush1.bf16.msra.mxu0 %v2469_v39  ;;  %v616_v39 = vld [vmem:[#allocation5 + $0xf80] sm:$0xff] }
 0x1bc   :  { %2472 = vmatprep.subr.bf16.mxu0 %v2471_v40  ;;  %v622_v40 = vld [vmem:[#allocation5 + $0xfb0] sm:$0xff] }
 0x1bd   :  { %v2513_v43 = vpack.c.bf16 %v622_v40, %v616_v39  ;;  %v1441_v40 = vld [vmem:[#allocation8 + $0x220] sm:$0xff] }
 0x1bf   :  { %2474 = vmatpush1.bf16.msra.mxu0 %v2473_v45  ;;  %v628_v45 = vld [vmem:[#allocation5 + $0xfe0] sm:$0xff] }
 0x1c0   :  { %2476 = vmatprep.subr.bf16.mxu0 %v2475_v46  ;;  %v634_v46 = vld [vmem:[#allocation5 + $0x1010] sm:$0xff] }
 0x1c1   :  { %v2517_v49 = vpack.c.bf16 %v634_v46, %v628_v45  ;;  %v1445_v46 = vld [vmem:[#allocation8 + $0x240] sm:$0xff] }
 0x1c2   :  { %1290 = vmatmul.mubr.f32.vlgmr.msra.gmra.mrb[2].mxu0 %v2808_v57  ;;  %v652_v57 = vld [vmem:[#allocation5 + $0x10a0] sm:$0xff] }
 0x1c3   :  { %2478 = vmatpush1.bf16.msra.mxu0 %v2477_v51  ;;  %1360 = vmatprep.mubr.f32.mxu0 %v2809_v59  ;;  %v640_v51 = vld [vmem:[#allocation5 + $0x1040] sm:$0xff]  ;;  %v665_v59 = vld [vmem:[#allocation5 + $0x1108] sm:$0xff] }
 0x1c4   :  { %2480 = vmatprep.subr.bf16.mxu0 %v2479_v52  ;;  %v646_v52 = vld [vmem:[#allocation5 + $0x1070] sm:$0xff] }
 0x1c5   :  { %v2521_v55 = vpack.c.bf16 %v646_v52, %v640_v51  ;;  %v1449_v52 = vld [vmem:[#allocation8 + $0x260] sm:$0xff] }
 0x1c7   :  { %2482 = vmatpush1.bf16.msra.mxu0 %v2481_v58  ;;  %v658_v58 = vld [vmem:[#allocation5 + $0x10d0] sm:$0xff] }
 0x1c8   :  { %2484 = vmatprep.subr.bf16.mxu0 %v2483_v60  ;;  %v671_v60 = vld [vmem:[#allocation5 + $0x1138] sm:$0xff]  ;;  %v2525_v61 = vpack.c.bf16 %v658_v58, %v652_v57  ;;  %v1453_v58 = vld [vmem:[#allocation8 + $0x280] sm:$0xff] }
 0x1c9   :  { %v2527_v62 = vpack.c.bf16 %v671_v60, %v665_v59  ;;  %v1455_v59 = vld [vmem:[#allocation8 + $0x290] sm:$0xff]  ;;  %v1458_v60 = vld [vmem:[#allocation8 + $0x2a8] sm:$0xff] }
 0x1cb   :  { %2486 = vmatpush1.bf16.msra.mxu0 %v2485_v1  ;;  %v677_v1 = vld [vmem:[#allocation5 + $0x1168] sm:$0xff] }
 0x1cc   :  { %2488 = vmatprep.subr.bf16.mxu0 %v2487_v2  ;;  %v683_v2 = vld [vmem:[#allocation5 + $0x1198] sm:$0xff] }
 0x1cd   :  { %v2531_v4 = vpack.c.bf16 %v683_v2, %v677_v1  ;;  %v1459_v1 = vld [vmem:[#allocation8 + $0x2b0] sm:$0xff]  ;;  %v1462_v2 = vld [vmem:[#allocation8 + $0x2c8] sm:$0xff] }
 0x1cf   :  { %2490 = vmatpush1.bf16.msra.mxu0 %v2489_v7  ;;  %v689_v7 = vld [vmem:[#allocation5 + $0x11c8] sm:$0xff] }
 0x1d0   :  { %2492 = vmatprep.subr.bf16.mxu0 %v2491_v8  ;;  %v695_v8 = vld [vmem:[#allocation5 + $0x11f8] sm:$0xff] }
 0x1d1   :  { %v2535_v10 = vpack.c.bf16 %v695_v8, %v689_v7  ;;  %v1463_v7 = vld [vmem:[#allocation8 + $0x2d0] sm:$0xff]  ;;  %v1466_v8 = vld [vmem:[#allocation8 + $0x2e8] sm:$0xff] }
 0x1d3   :  { %2494 = vmatpush1.bf16.msra.mxu0 %v2493_v13  ;;  %v2537_v13 = vpack.c.bf16 %v694_v12, %v688_v11  ;;  %v1465_v12 = vld [vmem:[#allocation8 + $0x2e0] sm:$0xff] }
 0x1d4   :  { %2496 = vmatprep.subr.bf16.mxu0 %v2495_v14  ;;  %v2810_v14 = vld [vmem:[#allocation2 + $0x20] sm:$0xff] }
 0x1d7   :  { %2498 = vmatpush1.bf16.msra.mxu0 %v2497_v19  ;;  %v704_v19 = vsub.s32 1, %v3135_v16 }
 0x1d8   :  { %2500 = vmatprep.subr.bf16.mxu0 %v2499_v20  ;;  %v712_v20 = vsub.s32 3, %v3135_v16 }
 0x1d9   :  { %v705_v22 = vrot.slane %v3138_v18, %v704_v19 }
 0x1da   :  { %v713_v23 = vrot.slane %v3138_v18, %v712_v20 }
 0x1db   :  { %2502 = vmatpush1.bf16.msra.mxu0 %v2501_v25 }
 0x1dc   :  { %2504 = vmatprep.subr.bf16.mxu0 %v2503_v26 }
 0x1df   :  { %2506 = vmatpush1.bf16.msra.mxu0 %v2505_v31 }
 0x1e0   :  { %2508 = vmatprep.subr.bf16.mxu0 %v2507_v32  ;;  %v1442_v32 = vld [vmem:[#allocation8 + $0x228] sm:$0xff] }
 0x1e1   :  { %v2607_v39 = vpack.c.bf16 %v1444_v33, %v1442_v32  ;;  %v1480_v32 = vld [vmem:[#allocation8 + $0x358] sm:$0xff] }
 0x1e3   :  { %2510 = vmatpush1.bf16.msra.mxu0 %v2509_v37 }
 0x1e4   :  { %2512 = vmatprep.subr.bf16.mxu0 %v2511_v38 }
 0x1e7   :  { %2514 = vmatpush1.bf16.msra.mxu0 %v2513_v43  ;;  %v1448_v43 = vld [vmem:[#allocation8 + $0x258] sm:$0xff] }
 0x1e8   :  { %2516 = vmatprep.subr.bf16.mxu0 %v2515_v44  ;;  %v2609_v44 = vpack.c.bf16 %v1443_v41, %v1441_v40  ;;  %v2611_v45 = vpack.c.bf16 %v1448_v43, %v1446_v42  ;;  %v1481_v41 = vld [vmem:[#allocation8 + $0x360] sm:$0xff]  ;;  %v1483_v42 = vld [vmem:[#allocation8 + $0x370] sm:$0xff]  ;;  %v1486_v43 = vld [vmem:[#allocation8 + $0x388] sm:$0xff] }
 0x1eb   :  { %2518 = vmatpush1.bf16.msra.mxu0 %v2517_v49  ;;  %v1452_v49 = vld [vmem:[#allocation8 + $0x278] sm:$0xff] }
 0x1ec   :  { %2520 = vmatprep.subr.bf16.mxu0 %v2519_v50  ;;  %v2613_v50 = vpack.c.bf16 %v1447_v47, %v1445_v46  ;;  %v2615_v51 = vpack.c.bf16 %v1452_v49, %v1450_v48  ;;  %v1485_v47 = vld [vmem:[#allocation8 + $0x380] sm:$0xff]  ;;  %v1487_v48 = vld [vmem:[#allocation8 + $0x390] sm:$0xff]  ;;  %v1490_v49 = vld [vmem:[#allocation8 + $0x3a8] sm:$0xff] }
 0x1ef   :  { %2522 = vmatpush1.bf16.msra.mxu0 %v2521_v55  ;;  %v1456_v55 = vld [vmem:[#allocation8 + $0x298] sm:$0xff] }
 0x1f0   :  { %2524 = vmatprep.subr.bf16.mxu0 %v2523_v56  ;;  %v2617_v56 = vpack.c.bf16 %v1451_v53, %v1449_v52  ;;  %v2619_v57 = vpack.c.bf16 %v1456_v55, %v1454_v54  ;;  %v1489_v53 = vld [vmem:[#allocation8 + $0x3a0] sm:$0xff]  ;;  %v1491_v54 = vld [vmem:[#allocation8 + $0x3b0] sm:$0xff]  ;;  %v1494_v55 = vld [vmem:[#allocation8 + $0x3c8] sm:$0xff] }
 0x1f3   :  { %2526 = vmatpush1.bf16.msra.mxu0 %v2525_v61  ;;  %v1460_v61 = vld [vmem:[#allocation8 + $0x2b8] sm:$0xff] }
 0x1f4   :  { %2528 = vmatprep.subr.bf16.mxu0 %v2527_v62  ;;  %v2621_v62 = vpack.c.bf16 %v1455_v59, %v1453_v58  ;;  %v2623_v63 = vpack.c.bf16 %v1460_v61, %v1458_v60  ;;  %v708_v58 = vsub.s32 2, %v3135_v16  ;;  %v1493_v60 = vld [vmem:[#allocation8 + $0x3c0] sm:$0xff]  ;;  %v1495_v61 = vld [vmem:[#allocation8 + $0x3d0] sm:$0xff] }
 0x1f7   :  { %2530 = vmatpush1.bf16.msra.mxu0 %v2529_v3  ;;  %v1464_v3 = vld [vmem:[#allocation8 + $0x2d8] sm:$0xff] }
 0x1f8   :  { %2532 = vmatprep.subr.bf16.mxu0 %v2531_v4  ;;  %v2625_v4 = vpack.c.bf16 %v1459_v1, %v1457_v0  ;;  %v2627_v5 = vpack.c.bf16 %v1464_v3, %v1462_v2  ;;  %v2661_v0 = vpack.c.bf16 %v1495_v61, %v1493_v60  ;;  %v709_v1 = vrot.slane %v3138_v18, %v708_v58  ;;  %v1497_v3 = vld [vmem:[#allocation8 + $0x3e0] sm:$0xff]  ;;  %v1798_v60 = vld [vmem:[#allocation11 + $0x30] sm:$0xff] }
 0x1f9   :  { %v1517_v58 = vld [vmem:[#allocation8 + $0x480] sm:$0xff] }
 0x1fa   :  { %v1799_v61 = vld [vmem:[#allocation11 + $0x38] sm:$0xff] }
 0x1fb   :  { %2534 = vmatpush1.bf16.msra.mxu0 %v2533_v9  ;;  %v1468_v9 = vld [vmem:[#allocation8 + $0x2f8] sm:$0xff] }
 0x1fc   :  { %2536 = vmatprep.subr.bf16.mxu0 %v2535_v10  ;;  %v2629_v10 = vpack.c.bf16 %v1463_v7, %v1461_v6  ;;  %v2631_v11 = vpack.c.bf16 %v1468_v9, %v1466_v8  ;;  %v1504_v6 = vld [vmem:[#allocation8 + $0x418] sm:$0xff] }
 0x1ff   :  { %2538 = vmatpush1.bf16.msra.mxu0 %v2537_v13  ;;  %v1467_v13 = vld [vmem:[#allocation8 + $0x2f0] sm:$0xff] }
 0x200   :  { %v2633_v20 = vpack.c.bf16 %v1467_v13, %v1465_v12  ;;  %v1506_v12 = vld [vmem:[#allocation8 + $0x428] sm:$0xff]  ;;  %v1508_v13 = vld [vmem:[#allocation8 + $0x438] sm:$0xff] }
 0x202   :  { %1361 = vmatmul.mubr.f32.vlgmr.msra.gmra.mrb[2].mxu0 %v2810_v14  ;;  %v1470_v14 = vld [vmem:[#allocation8 + $0x308] sm:$0xff] }
 0x215   :  { %v936_v24 = vpop.f32.mrb[0].mxu0 }
 0x216   :  { %v2763_v25 = vadd.f32 %v936_v24, %v701_v21  ;;  %v938_v26 = vpop.f32.mrb[1].mxu0  ;;  %v2635_v21 = vpack.c.bf16 %v1472_v15, %v1470_v14  ;;  %v1474_v24 = vld [vmem:[#allocation8 + $0x328] sm:$0xff] }
 0x217   :  { %v3149_v27 = vpop.f32.mrb[0].mxu1  ;;  %v2764_v30 = vadd.f32 %v938_v26, %v705_v22  ;;  %v1469_v22 = vld [vmem:[#allocation8 + $0x300] sm:$0xff] }
 0x218   :  { %v1151_v31 = vpop.f32.mrb[1].mxu1  ;;  %v1367_v37 = vmax.f32 %v2763_v25, 0.0  ;;  %v1476_v25 = vld [vmem:[#allocation8 + $0x338] sm:$0xff]  ;;  %v2765_v8 = vadd.f32 %v3149_v27, %v709_v1  ;;  %v1809_v27 = vld [vmem:[#allocation11 + $0x88] sm:$0xff] }
 0x219   :  { %v2766_v34 = vadd.f32 %v1151_v31, %v713_v23  ;;  %v1368_v35 = vmax.f32 %v2764_v30, 0.0  ;;  %v1471_v23 = vld [vmem:[#allocation8 + $0x310] sm:$0xff]  ;;  %v2639_v28 = vpack.c.bf16 %v1476_v25, %v1474_v24  ;;  %v1478_v31 = vld [vmem:[#allocation8 + $0x348] sm:$0xff]  ;;  %v1512_v24 = vld [vmem:[#allocation8 + $0x458] sm:$0xff] }
 0x21a   :  { %v2637_v26 = vpack.c.bf16 %v1471_v23, %v1469_v22  ;;  %v1475_v30 = vld [vmem:[#allocation8 + $0x330] sm:$0xff]  ;;  %v1369_v15 = vmax.f32 %v2765_v8, 0.0  ;;  %v1510_v23 = vld [vmem:[#allocation8 + $0x448] sm:$0xff]  ;;  %v1509_v25 = vld [vmem:[#allocation8 + $0x440] sm:$0xff] }
 0x21b   :  { %v1370_v38 = vmax.f32 %v2766_v34, 0.0  ;;  %1641 = vmatprep.mubr.f32.mxu1 %v1368_v35  ;;  %v2641_v33 = vpack.c.bf16 %v1475_v30, %v1473_v29  ;;  %v2643_v34 = vpack.c.bf16 %v1480_v32, %v1478_v31  ;;  %v1477_v35 = vld [vmem:[#allocation8 + $0x340] sm:$0xff]  ;;  %v1507_v22 = vld [vmem:[#allocation8 + $0x430] sm:$0xff] }
 0x21c   :  { %1642 = vmatmul.mubr.f32.vlgmr.msra.gmra.mrb[2].mxu1 %v1367_v37  ;;  %v1482_v37 = vld [vmem:[#allocation8 + $0x368] sm:$0xff] }
 0x21d   :  { %2606 = vmatpush1.bf16.msra.mxu1 %v2605_v36  ;;  %1712 = vmatprep.mubr.f32.mxu1 %v1370_v38  ;;  %v1479_v36 = vld [vmem:[#allocation8 + $0x350] sm:$0xff]  ;;  %v1484_v38 = vld [vmem:[#allocation8 + $0x378] sm:$0xff]  ;;  %v1792_v29 = vld [vmem:[#allocation11] sm:$0xff] }
 0x21e   :  { %2608 = vmatprep.subr.bf16.mxu1 %v2607_v39  ;;  %v2645_v39 = vpack.c.bf16 %v1479_v36, %v1477_v35  ;;  %v2647_v40 = vpack.c.bf16 %v1484_v38, %v1482_v37  ;;  %v1793_v32 = vld [vmem:[#allocation11 + $0x8] sm:$0xff]  ;;  %v2675_v35 = vpack.c.bf16 %v1512_v24, %v1510_v23  ;;  %v1794_v38 = vld [vmem:[#allocation11 + $0x10] sm:$0xff]  ;;  %v1800_v8 = vld [vmem:[#allocation11 + $0x40] sm:$0xff] }
 0x21f   :  { %v2733_v36 = vpack.c.bf16 %v1793_v32, %v1792_v29  ;;  %v1817_v1 = vld [vmem:[#allocation11 + $0xc8] sm:$0xff]  ;;  %v1802_v24 = vld [vmem:[#allocation11 + $0x50] sm:$0xff] }
 0x220   :  { %v1821_v29 = vld [vmem:[#allocation11 + $0xe8] sm:$0xff] }
 0x221   :  { %2610 = vmatpush1.bf16.msra.mxu1 %v2609_v44  ;;  %v1488_v44 = vld [vmem:[#allocation8 + $0x398] sm:$0xff] }
 0x222   :  { %2612 = vmatprep.subr.bf16.mxu1 %v2611_v45  ;;  %v2649_v45 = vpack.c.bf16 %v1483_v42, %v1481_v41  ;;  %v2651_v46 = vpack.c.bf16 %v1488_v44, %v1486_v43  ;;  %v1514_v41 = vld [vmem:[#allocation8 + $0x468] sm:$0xff]  ;;  %v1516_v42 = vld [vmem:[#allocation8 + $0x478] sm:$0xff] }
 0x223   :  { %v1813_v43 = vld [vmem:[#allocation11 + $0xa8] sm:$0xff] }
 0x225   :  { %2614 = vmatpush1.bf16.msra.mxu1 %v2613_v50  ;;  %v1492_v50 = vld [vmem:[#allocation8 + $0x3b8] sm:$0xff] }
 0x226   :  { %2616 = vmatprep.subr.bf16.mxu1 %v2615_v51  ;;  %v2653_v51 = vpack.c.bf16 %v1487_v48, %v1485_v47  ;;  %v2655_v52 = vpack.c.bf16 %v1492_v50, %v1490_v49  ;;  %v1796_v48 = vld [vmem:[#allocation11 + $0x20] sm:$0xff]  ;;  %v1797_v49 = vld [vmem:[#allocation11 + $0x28] sm:$0xff]  ;;  %v2679_v50 = vpack.c.bf16 %v1516_v42, %v1514_v41 }
 0x227   :  { %v1533_v42 = vld [vmem:[#allocation8 + $0x500] sm:$0xff] }
 0x229   :  { %2618 = vmatpush1.bf16.msra.mxu1 %v2617_v56  ;;  %v1496_v56 = vld [vmem:[#allocation8 + $0x3d8] sm:$0xff] }
 0x22a   :  { %2620 = vmatprep.subr.bf16.mxu1 %v2619_v57  ;;  %v2657_v57 = vpack.c.bf16 %v1491_v54, %v1489_v53  ;;  %v2659_v59 = vpack.c.bf16 %v1496_v56, %v1494_v55  ;;  %v1815_v53 = vld [vmem:[#allocation11 + $0xb8] sm:$0xff]  ;;  %v1518_v54 = vld [vmem:[#allocation8 + $0x488] sm:$0xff]  ;;  %v2741_v56 = vpack.c.bf16 %v1797_v49, %v1796_v48  ;;  %v1539_v49 = vld [vmem:[#allocation8 + $0x530] sm:$0xff] }
 0x22b   :  { %v1520_v55 = vld [vmem:[#allocation8 + $0x498] sm:$0xff]  ;;  %v1537_v48 = vld [vmem:[#allocation8 + $0x520] sm:$0xff] }
 0x22d   :  { %2622 = vmatpush1.bf16.msra.mxu1 %v2621_v62  ;;  %v1498_v62 = vld [vmem:[#allocation8 + $0x3e8] sm:$0xff] }
 0x22e   :  { %2624 = vmatprep.subr.bf16.mxu1 %v2623_v63  ;;  %v1500_v63 = vld [vmem:[#allocation8 + $0x3f8] sm:$0xff] }
 0x22f   :  { %v2663_v2 = vpack.c.bf16 %v1500_v63, %v1498_v62  ;;  %v2683_v62 = vpack.c.bf16 %v1520_v55, %v1518_v54  ;;  %v1519_v63 = vld [vmem:[#allocation8 + $0x490] sm:$0xff]  ;;  %v1541_v54 = vld [vmem:[#allocation8 + $0x540] sm:$0xff] }
 0x230   :  { %v1543_v55 = vld [vmem:[#allocation8 + $0x550] sm:$0xff] }
 0x231   :  { %2626 = vmatpush1.bf16.msra.mxu1 %v2625_v4  ;;  %v1499_v4 = vld [vmem:[#allocation8 + $0x3f0] sm:$0xff] }
 0x232   :  { %2628 = vmatprep.subr.bf16.mxu1 %v2627_v5  ;;  %v1502_v5 = vld [vmem:[#allocation8 + $0x408] sm:$0xff]  ;;  %v2665_v7 = vpack.c.bf16 %v1499_v4, %v1497_v3  ;;  %v1524_v3 = vld [vmem:[#allocation8 + $0x4b8] sm:$0xff]  ;;  %v2745_v4 = vpack.c.bf16 %v1799_v61, %v1798_v60  ;;  %v1545_v60 = vld [vmem:[#allocation8 + $0x560] sm:$0xff] }
 0x233   :  { %v2667_v9 = vpack.c.bf16 %v1504_v6, %v1502_v5  ;;  %v2685_v5 = vpack.c.bf16 %v1519_v63, %v1517_v58  ;;  %v1521_v6 = vld [vmem:[#allocation8 + $0x4a0] sm:$0xff]  ;;  %v2709_v58 = vpack.c.bf16 %v1543_v55, %v1541_v54  ;;  %v1547_v61 = vld [vmem:[#allocation8 + $0x570] sm:$0xff]  ;;  %v1552_v63 = vld [vmem:[#allocation8 + $0x598] sm:$0xff] }
 0x234   :  { %v1926_v55 = vld [vmem:[#allocation13] ss:$0 sm:$0xff] }
 0x235   :  { %2630 = vmatpush1.bf16.msra.mxu1 %v2629_v10  ;;  %v1501_v10 = vld [vmem:[#allocation8 + $0x400] sm:$0xff] }
 0x236   :  { %2632 = vmatprep.subr.bf16.mxu1 %v2631_v11  ;;  %v1503_v11 = vld [vmem:[#allocation8 + $0x410] sm:$0xff] }
 0x237   :  { %v2669_v14 = vpack.c.bf16 %v1503_v11, %v1501_v10  ;;  %v1523_v11 = vld [vmem:[#allocation8 + $0x4b0] sm:$0xff] }
 0x239   :  { %2634 = vmatpush1.bf16.msra.mxu1 %v2633_v20  ;;  %v2671_v20 = vpack.c.bf16 %v1508_v13, %v1506_v12  ;;  %v1818_v12 = vld [vmem:[#allocation11 + $0xd0] sm:$0xff]  ;;  %v1819_v13 = vld [vmem:[#allocation11 + $0xd8] sm:$0xff] }
 0x23a   :  { %2636 = vmatprep.subr.bf16.mxu1 %v2635_v21  ;;  %v1505_v21 = vld [vmem:[#allocation8 + $0x420] sm:$0xff]  ;;  %v2751_v23 = vpack.c.bf16 %v1819_v13, %v1818_v12 }
 0x23b   :  { %v2673_v30 = vpack.c.bf16 %v1507_v22, %v1505_v21  ;;  %v2689_v21 = vpack.c.bf16 %v1523_v11, %v1521_v6  ;;  %v1525_v22 = vld [vmem:[#allocation8 + $0x4c0] sm:$0xff]  ;;  %v1560_v11 = vld [vmem:[#allocation8 + $0x5d8] sm:$0xff] }
 0x23d   :  { %2638 = vmatpush1.bf16.msra.mxu1 %v2637_v26  ;;  %v1511_v26 = vld [vmem:[#allocation8 + $0x450] sm:$0xff] }
 0x23e   :  { %2640 = vmatprep.subr.bf16.mxu1 %v2639_v28  ;;  %v1808_v28 = vld [vmem:[#allocation11 + $0x80] sm:$0xff] }
 0x23f   :  { %v2731_v31 = vpack.c.bf16 %v1809_v27, %v1808_v28  ;;  %v1527_v28 = vld [vmem:[#allocation8 + $0x4d0] sm:$0xff]  ;;  %v1820_v27 = vld [vmem:[#allocation11 + $0xe0] sm:$0xff] }
 0x241   :  { %2642 = vmatpush1.bf16.msra.mxu1 %v2641_v33  ;;  %v1810_v33 = vld [vmem:[#allocation11 + $0x90] sm:$0xff]  ;;  %2732 = vmatprep.subr.bf16.mxu0 %v2731_v31 }
 0x242   :  { %2644 = vmatprep.subr.bf16.mxu1 %v2643_v34  ;;  %v1811_v34 = vld [vmem:[#allocation11 + $0x98] sm:$0xff]  ;;  %2734 = vmatpush3.bf16.msra.mxu0 %v2733_v36 }
 0x243   :  { %v2735_v37 = vpack.c.bf16 %v1811_v34, %v1810_v33  ;;  %v1532_v31 = vld [vmem:[#allocation8 + $0x4f8] sm:$0xff]  ;;  %v2693_v33 = vpack.c.bf16 %v1527_v28, %v1525_v22  ;;  %v2755_v34 = vpack.c.bf16 %v1821_v29, %v1820_v27  ;;  %v1529_v36 = vld [vmem:[#allocation8 + $0x4e0] sm:$0xff]  ;;  %v716_v28 = vsub.s32 4, %v3135_v16 }
 0x244   :  { %v720_v27 = vsub.s32 5, %v3135_v16 }
 0x245   :  { %2646 = vmatpush1.bf16.msra.mxu1 %v2645_v39  ;;  %v1795_v39 = vld [vmem:[#allocation11 + $0x18] sm:$0xff]  ;;  %2736 = vmatprep.subr.bf16.mxu0 %v2735_v37  ;;  %v1531_v37 = vld [vmem:[#allocation8 + $0x4f0] sm:$0xff]  ;;  %v717_v29 = vrot.slane %v3138_v18, %v716_v28 }
 0x246   :  { %2648 = vmatprep.subr.bf16.mxu1 %v2647_v40  ;;  %v1812_v40 = vld [vmem:[#allocation11 + $0xa0] sm:$0xff]  ;;  %v2737_v44 = vpack.c.bf16 %v1795_v39, %v1794_v38  ;;  %v1536_v39 = vld [vmem:[#allocation8 + $0x518] sm:$0xff] }
 0x247   :  { %v2739_v47 = vpack.c.bf16 %v1813_v43, %v1812_v40  ;;  %v1534_v38 = vld [vmem:[#allocation8 + $0x508] sm:$0xff]  ;;  %v2697_v40 = vpack.c.bf16 %v1531_v37, %v1529_v36  ;;  %v1535_v43 = vld [vmem:[#allocation8 + $0x510] sm:$0xff] }
 0x248   :  { %2738 = vmatpush3.bf16.msra.mxu0 %v2737_v44  ;;  %v2699_v41 = vpack.c.bf16 %v1536_v39, %v1534_v38  ;;  %v1538_v44 = vld [vmem:[#allocation8 + $0x528] sm:$0xff] }
 0x249   :  { %2650 = vmatpush1.bf16.msra.mxu1 %v2649_v45  ;;  %v2677_v45 = vpack.c.bf16 %v1511_v26, %v1509_v25  ;;  %2740 = vmatprep.subr.bf16.mxu0 %v2739_v47  ;;  %v1803_v25 = vld [vmem:[#allocation11 + $0x58] sm:$0xff]  ;;  %v1804_v37 = vld [vmem:[#allocation11 + $0x60] sm:$0xff]  ;;  %v1805_v38 = vld [vmem:[#allocation11 + $0x68] sm:$0xff] }
 0x24a   :  { %2652 = vmatprep.subr.bf16.mxu1 %v2651_v46  ;;  %v1513_v46 = vld [vmem:[#allocation8 + $0x460] sm:$0xff]  ;;  %v2753_v32 = vpack.c.bf16 %v1803_v25, %v1802_v24  ;;  %v1563_v25 = vld [vmem:[#allocation8 + $0x5f0] sm:$0xff]  ;;  %v2757_v39 = vpack.c.bf16 %v1805_v38, %v1804_v37 }
 0x24b   :  { %v1561_v24 = vld [vmem:[#allocation8 + $0x5e0] sm:$0xff] }
 0x24c   :  { %2742 = vmatpush3.bf16.msra.mxu0 %v2741_v56  ;;  %v1546_v56 = vld [vmem:[#allocation8 + $0x568] sm:$0xff] }
 0x24d   :  { %2654 = vmatpush1.bf16.msra.mxu1 %v2653_v51  ;;  %v1515_v51 = vld [vmem:[#allocation8 + $0x470] sm:$0xff] }
 0x24e   :  { %2656 = vmatprep.subr.bf16.mxu1 %v2655_v52  ;;  %v1814_v52 = vld [vmem:[#allocation11 + $0xb0] sm:$0xff] }
 0x251   :  { %2658 = vmatpush1.bf16.msra.mxu1 %v2657_v57  ;;  %v2681_v57 = vpack.c.bf16 %v1515_v51, %v1513_v46  ;;  %v2701_v46 = vpack.c.bf16 %v1535_v43, %v1533_v42  ;;  %v1544_v51 = vld [vmem:[#allocation8 + $0x558] sm:$0xff] }
 0x252   :  { %2660 = vmatprep.subr.bf16.mxu1 %v2659_v59  ;;  %v2743_v59 = vpack.c.bf16 %v1815_v53, %v1814_v52  ;;  %v2705_v52 = vpack.c.bf16 %v1539_v49, %v1537_v48  ;;  %v1806_v43 = vld [vmem:[#allocation11 + $0x70] sm:$0xff] }
 0x254   :  { %2744 = vmatprep.subr.bf16.mxu0 %v2743_v59 }
 0x255   :  { %2662 = vmatpush1.bf16.msra.mxu1 %v2661_v0  ;;  %v1816_v0 = vld [vmem:[#allocation11 + $0xc0] sm:$0xff]  ;;  %2746 = vmatpush3.bf16.msra.mxu0 %v2745_v4 }
 0x256   :  { %2664 = vmatprep.subr.bf16.mxu1 %v2663_v2  ;;  %v1522_v2 = vld [vmem:[#allocation8 + $0x4a8] sm:$0xff] }
 0x257   :  { %v2687_v10 = vpack.c.bf16 %v1524_v3, %v1522_v2  ;;  %v1549_v2 = vld [vmem:[#allocation8 + $0x580] sm:$0xff]  ;;  %v1551_v3 = vld [vmem:[#allocation8 + $0x590] sm:$0xff]  ;;  %v1554_v4 = vld [vmem:[#allocation8 + $0x5a8] sm:$0xff] }
 0x258   :  { %v2717_v6 = vpack.c.bf16 %v1551_v3, %v1549_v2 }
 0x259   :  { %2666 = vmatpush1.bf16.msra.mxu1 %v2665_v7  ;;  %v2747_v7 = vpack.c.bf16 %v1817_v1, %v1816_v0  ;;  %v2713_v0 = vpack.c.bf16 %v1547_v61, %v1545_v60 }
 0x25a   :  { %2668 = vmatprep.subr.bf16.mxu1 %v2667_v9  ;;  %v1801_v9 = vld [vmem:[#allocation11 + $0x48] sm:$0xff] }
 0x25b   :  { %2748 = vmatprep.subr.bf16.mxu0 %v2747_v7 }
 0x25c   :  { %1713 = vmatmul.mubr.f32.vlgmr.msra.gmra.mrb[2].mxu1 %v1369_v15  ;;  %v1528_v15 = vld [vmem:[#allocation8 + $0x4d8] sm:$0xff] }
 0x25d   :  { %2670 = vmatpush1.bf16.msra.mxu1 %v2669_v14  ;;  %v1526_v14 = vld [vmem:[#allocation8 + $0x4c8] sm:$0xff] }
 0x25e   :  { %2672 = vmatprep.subr.bf16.mxu1 %v2671_v20  ;;  %v2749_v20 = vpack.c.bf16 %v1801_v9, %v1800_v8  ;;  %v2691_v26 = vpack.c.bf16 %v1528_v15, %v1526_v14  ;;  %v1553_v8 = vld [vmem:[#allocation8 + $0x5a0] sm:$0xff]  ;;  %v1555_v9 = vld [vmem:[#allocation8 + $0x5b0] sm:$0xff] }
 0x25f   :  { %v2721_v12 = vpack.c.bf16 %v1555_v9, %v1553_v8  ;;  %v1557_v14 = vld [vmem:[#allocation8 + $0x5c0] sm:$0xff]  ;;  %v1559_v15 = vld [vmem:[#allocation8 + $0x5d0] sm:$0xff] }
 0x260   :  { %2750 = vmatpush3.bf16.msra.mxu0 %v2749_v20  ;;  %v1562_v20 = vld [vmem:[#allocation8 + $0x5e8] sm:$0xff]  ;;  %v2725_v22 = vpack.c.bf16 %v1559_v15, %v1557_v14 }
 0x261   :  { %2674 = vmatpush1.bf16.msra.mxu1 %v2673_v30  ;;  %v1530_v30 = vld [vmem:[#allocation8 + $0x4e8] sm:$0xff]  ;;  %2752 = vmatprep.subr.bf16.mxu0 %v2751_v23 }
 0x262   :  { %2676 = vmatprep.subr.bf16.mxu1 %v2675_v35  ;;  %v2695_v35 = vpack.c.bf16 %v1532_v31, %v1530_v30  ;;  %v721_v30 = vrot.slane %v3138_v18, %v720_v27  ;;  %v1565_v18 = vld [vmem:[#allocation10] sm:$0x3] }
 0x264   :  { %2754 = vmatpush3.bf16.msra.mxu0 %v2753_v32 }
 0x265   :  { %2678 = vmatpush1.bf16.msra.mxu1 %v2677_v45  ;;  %2756 = vmatprep.subr.bf16.mxu0 %v2755_v34  ;;  %v1540_v45 = vld [vmem:[#allocation8 + $0x538] sm:$0xff] }
 0x266   :  { %2680 = vmatprep.subr.bf16.mxu1 %v2679_v50  ;;  %v2703_v47 = vpack.c.bf16 %v1540_v45, %v1538_v44  ;;  %v1542_v50 = vld [vmem:[#allocation8 + $0x548] sm:$0xff]  ;;  %v1807_v44 = vld [vmem:[#allocation11 + $0x78] sm:$0xff] }
 0x267   :  { %v2707_v53 = vpack.c.bf16 %v1544_v51, %v1542_v50  ;;  %v2761_v45 = vpack.c.bf16 %v1807_v44, %v1806_v43 }
 0x268   :  { %2758 = vmatpush3.bf16.msra.mxu0 %v2757_v39 }
 0x269   :  { %2682 = vmatpush1.bf16.msra.mxu1 %v2681_v57  ;;  %v1548_v57 = vld [vmem:[#allocation8 + $0x578] sm:$0xff] }
 0x26a   :  { %2684 = vmatprep.subr.bf16.mxu1 %v2683_v62  ;;  %v2711_v59 = vpack.c.bf16 %v1548_v57, %v1546_v56  ;;  %v1550_v62 = vld [vmem:[#allocation8 + $0x588] sm:$0xff] }
 0x26b   :  { %v2715_v1 = vpack.c.bf16 %v1552_v63, %v1550_v62 }
 0x26d   :  { %2686 = vmatpush1.bf16.msra.mxu1 %v2685_v5  ;;  %v1556_v5 = vld [vmem:[#allocation8 + $0x5b8] sm:$0xff] }
 0x26e   :  { %2688 = vmatprep.subr.bf16.mxu1 %v2687_v10  ;;  %v2719_v7 = vpack.c.bf16 %v1556_v5, %v1554_v4  ;;  %v1558_v10 = vld [vmem:[#allocation8 + $0x5c8] sm:$0xff] }
 0x26f   :  { %v2723_v13 = vpack.c.bf16 %v1560_v11, %v1558_v10 }
 0x271   :  { %2690 = vmatpush1.bf16.msra.mxu1 %v2689_v21  ;;  %v1564_v21 = vld [vmem:[#allocation8 + $0x5f8] sm:$0xff] }
 0x272   :  { %2692 = vmatprep.subr.bf16.mxu1 %v2691_v26  ;;  %v2727_v23 = vpack.c.bf16 %v1564_v21, %v1562_v20  ;;  %v2729_v26 = vpack.c.bf16 %v1563_v25, %v1561_v24 }
 0x275   :  { %2694 = vmatpush1.bf16.msra.mxu1 %v2693_v33 }
 0x276   :  { %2696 = vmatprep.subr.bf16.mxu1 %v2695_v35 }
 0x279   :  { %2698 = vmatpush1.bf16.msra.mxu1 %v2697_v40  ;;  %v1822_v40 = vld [vmem:[#allocation11 + $0xf0] sm:$0xff] }
 0x27a   :  { %2700 = vmatprep.subr.bf16.mxu1 %v2699_v41  ;;  %v1823_v41 = vld [vmem:[#allocation11 + $0xf8] sm:$0xff] }
 0x27b   :  { %v2759_v42 = vpack.c.bf16 %v1823_v41, %v1822_v40 }
 0x27d   :  { %2702 = vmatpush1.bf16.msra.mxu1 %v2701_v46  ;;  %2760 = vmatprep.subr.bf16.mxu0 %v2759_v42  ;;  %v1570_v46 = vrot.slane %v1565_v18, %v700_v17 }
 0x27e   :  { %2704 = vmatprep.subr.bf16.mxu1 %v2703_v47  ;;  %2762 = vmatpush3.bf16.msra.mxu0 %v2761_v45  ;;  %v1574_v47 = vrot.slane %v1565_v18, %v704_v19 }
 0x281   :  { %2706 = vmatpush1.bf16.msra.mxu1 %v2705_v52 }
 0x282   :  { %2708 = vmatprep.subr.bf16.mxu1 %v2707_v53 }
 0x285   :  { %2710 = vmatpush1.bf16.msra.mxu1 %v2709_v58 }
 0x286   :  { %2712 = vmatprep.subr.bf16.mxu1 %v2711_v59 }
 0x289   :  { %2714 = vmatpush1.bf16.msra.mxu1 %v2713_v0 }
 0x28a   :  { %2716 = vmatprep.subr.bf16.mxu1 %v2715_v1 }
 0x28d   :  { %2718 = vmatpush1.bf16.msra.mxu1 %v2717_v6 }
 0x28e   :  { %2720 = vmatprep.subr.bf16.mxu1 %v2719_v7 }
 0x291   :  { %2722 = vmatpush1.bf16.msra.mxu1 %v2721_v12 }
 0x292   :  { %2724 = vmatprep.subr.bf16.mxu1 %v2723_v13 }
 0x295   :  { %2726 = vmatpush1.bf16.msra.mxu1 %v2725_v22 }
 0x296   :  { %2728 = vmatprep.subr.bf16.mxu1 %v2727_v23 }
 0x299   :  { %2730 = vmatpush1.bf16.msra.mxu1 %v2729_v26 }
 0x2d5   :  { %v1362_v31 = vpop.f32.mrb[2].mxu0 }
 0x2d6   :  { %v2767_v32 = vadd.f32 %v1362_v31, %v717_v29  ;;  %v1364_v33 = vpop.f32.mrb[3].mxu0 }
 0x2d7   :  { %v2768_v34 = vadd.f32 %v1364_v33, %v721_v30 }
 0x2d8   :  { %v1371_v36 = vmax.f32 %v2767_v32, 0.0 }
 0x2d9   :  { %v1372_v35 = vmax.f32 %v2768_v34, 0.0 }
 0x2db   :  { %1783 = vmatprep.mubr.f32.mxu1 %v1372_v35 }
 0x2dc   :  { %1784 = vmatmul.mubr.f32.vlgmr.msra.gmra.mrb[2].mxu1 %v1371_v36 }
 0x3af   :  { %v1785_v48 = vpop.f32.mrb[2].mxu1 }
 0x3b0   :  { %v2769_v49 = vadd.f32 %v1785_v48, %v1570_v46  ;;  %v1787_v50 = vpop.f32.mrb[3].mxu1 }
 0x3b1   :  { %v2770_v51 = vadd.f32 %v1787_v50, %v1574_v47 }
 0x3b2   :  { %v1790_v53 = vmax.f32 %v2769_v49, 0.0 }
 0x3b3   :  { %v1791_v52 = vmax.f32 %v2770_v51, 0.0 }
 0x3b5   :  { %1895 = vmatprep.mubr.f32.mxu0 %v1791_v52 }
 0x3b6   :  { %1896 = vmatmul.mubr.f32.vlgmr.msra.gmra.mrb[4].mxu0 %v1790_v53 }
 0x489   :  { %v1960_v54 = vpop.f32.mrb[4].mxu0 }
 0x48a   :  { %v1961_v56 = vpop.f32.mrb[5].mxu0 }
 0x48b   :  { %v1962_v57 = vadd.f32 %v1961_v56, %v1960_v54 }
 0x48d   :  { %v1898_v58 = vadd.f32 %v1962_v57, %v1926_v55 }
 0x48f   :  { %v1927_v59 = vmul.f32 -1.442695, %v1898_v58 }
 0x491   :  { %2801 = vpow2.f32 %v1927_v59 }
 0x49b   :  { %v2802_v60 = vpop.eup %2801 }
 0x49c   :  { %v1904_v17 = vadd.f32 1.0, %v2802_v60 }
 0x49e   :  { %2803 = vrcp.f32 %v1904_v17 }
 0x4a8   :  { %v2804_v16 = vpop.eup %2803 }
 0x4a9   :  { %1907 = vst [vmem:[#allocation14] sm:$0xff] %v2804_v16 }
 0x4aa   :  { %2976 = shalt.err (!%p2973_p4)
}
 0x4ab   :  { %s2977_s15 = scalar_lea.hbm %s3181_s7, 128 }
 0x4ac   :  { %p2978_p5 = scmp.ne.s32.totalorder %s3181_s7, %s2977_s15  ;;  %p2981_p6 = scmp.lt.u32.totalorder %s2977_s15, %s3181_s7 }
 0x4ae   :  { %p2983_p7 = pnand %p2981_p6, %p2978_p5 }
 0x4b0   :  { %2986 = shalt.err (!%p2983_p7)
}
 0x4b1   :  { %1917 = dma.vmem_to_hbm [thread:$0]  %s1915_s13, 128, %s3181_s7, [#allocation4]  }
 0x4b2   :  { %2995 = dma.done.wait [#allocation4], 128  }
 0x4b3   :  { %2996 = vsyncadd [#allocation4], 4294967168 }
 0x4b4   :  { %1921 = vsyncpa [#allocation3], 1 }
 0x4b5   :  { %1922 = vsyncpa [#allocation6], 1 }
 0x4b6   :  { %1923 = vsyncpa [#allocation9], 1 }
 0x4b7   :  { %1924 = vsyncpa [#allocation12], 1 }
 0x4b8   :  { %1925 = vsyncpa [#allocation4], 1 }

</bundles_post_ra>
